<compile_context>
chip_gen: v6e
topology: v6e:2x2x1
jax: 0.10.0
libtpu: 0.0.40
codegen_flags: <defaults>
</compile_context>

<pallas_src>
import functools

import jax
import jax.numpy as jnp
from jax.experimental import pallas as pl
from jax.experimental.pallas import tpu as pltpu

BN_EPS = 1e-5


# ------------------------------ Pallas kernel -------------------------------

def _bcb_kernel(x_ref, w_ref, b_ref, o_ref, *, th, wo, cin):
    """One (cout-tile, batch, row-tile) block of SiLU(BN(conv3x3(x))).

    x_ref : (th+2, wo+2, cin)  bf16  spatially padded input rows (with halo)
    w_ref : (9*cin, tn)        bf16  BN-folded conv weights, tap-major rows
    b_ref : (1, tn)            f32   BN-folded bias
    o_ref : (th*wo, tn)        bf16  lane-dense output block
    """
    x = x_ref[...]
    # VMEM im2col: build the (th*wo, 9*cin) patch once -> one deep-K matmul.
    patch = jnp.concatenate(
        [x[dh:dh + th, dw:dw + wo, :] for dh in range(3) for dw in range(3)],
        axis=-1).reshape(th * wo, 9 * cin)
    acc = jnp.dot(patch, w_ref[...], preferred_element_type=jnp.float32)
    acc = acc + b_ref[...]                         # folded BN bias
    acc = acc * jax.nn.sigmoid(acc)                # SiLU, f32 epilogue
    o_ref[...] = acc.astype(o_ref.dtype)


# -------------------------------- wrapper ------------------------------------

def _wide_mxu():
    """True for 256-wide-MXU parts (v6e/v7x); False for 128-wide (v2-v5e)."""
    try:
        kind = jax.devices()[0].device_kind.lower()
    except Exception:
        return True
    return not any(t in kind for t in ("v2", "v3", "v4", "v5 lite", "v5lite", "v5e"))


def bcb_forward(params, x_nchw, *, row_tile=None):
    """y = SiLU(BatchNorm2d(Conv2d(C, C, 3, padding=1)(x))); NCHW in/out."""
    w = params["conv_w"]              # (Cout, Cin, 3, 3) PyTorch layout
    b = params["conv_b"]              # (Cout,)
    gamma, beta = params["bn_gamma"], params["bn_beta"]
    mean, var = params["bn_mean"], params["bn_var"]

    n, cin, h, wdt = x_nchw.shape
    cout = w.shape[0]

    # TODO(synk): BatchNorm is folded with fixed running stats (inference
    # mode); PyTorch's default train-mode batch statistics are not reproduced.
    s = gamma / jnp.sqrt(var + BN_EPS)                    # (Cout,)
    w_hwio = jnp.transpose(w, (2, 3, 1, 0)) * s[None, None, None, :]
    b_folded = (b - mean) * s + beta

    # Cout padding (lane-dense outputs) and MXU-width-aware cout tile size.
    wide = _wide_mxu()
    cout_p = max(128, -(-cout // 128) * 128)
    if wide and cout_p % 256 != 0 and cout >= 192:
        cout_p = -(-cout // 256) * 256                    # fill the 256-wide MXU
    tn = 256 if (wide and cout_p % 256 == 0) else 128
    n_co = cout_p // tn

    if cout_p != cout:
        w_hwio = jnp.pad(w_hwio, ((0, 0), (0, 0), (0, 0), (0, cout_p - cout)))
        b_folded = jnp.pad(b_folded, ((0, cout_p - cout),))
    # Tap-major (dh, dw, cin) rows -> matches the in-kernel concat order.
    w9 = w_hwio.reshape(9 * cin, cout_p).astype(jnp.bfloat16)
    b2 = b_folded.reshape(1, cout_p).astype(jnp.float32)

    # ---- tile sizing from VMEM capacity (v7x has only 64 MiB per core) ----
    try:
        vmem_cap = int(pltpu.get_tpu_info().vmem_capacity_bytes)
    except Exception:
        vmem_cap = 64 << 20
    budget = min(20 << 20, vmem_cap // 3)
    # Rough per-output-row VMEM bytes: double-buffered bf16 x/out blocks, the
    # bf16 im2col patch, the f32 accumulator and tap-slice temporaries.
    per_row = (4 * (wdt + 2) * cin        # x block (bf16, x2 buffers)
               + 4 * wdt * tn             # out block (bf16, x2 buffers)
               + 18 * wdt * cin           # im2col patch (bf16, 9 taps)
               + 4 * wdt * tn             # f32 accumulator
               + 4 * wdt * cin)           # slice temporaries
    if row_tile is None:
        th_cap = max(8, budget // per_row)
    else:
        th_cap = max(1, row_tile)
    th_cap = min(th_cap, h)
    n_h = -(-h // th_cap)
    # v7x has 2 TensorCores per chip: keep >= 2 parallel grid steps if possible.
    if n * n_co * n_h < 2 and h > 8:
        n_h = 2
    th = -(-h // n_h)
    if th < h:
        th = min(h, -(-th // 8) * 8)      # sublane-friendly row count
    n_h = -(-h // th)
    h_pad = n_h * th

    est = (2 * (th + 2) * (wdt + 2) * cin * 2   # x block, double-buffered bf16
           + 2 * th * wdt * tn * 2              # out block, double-buffered bf16
           + 2 * 9 * cin * cout_p * 2           # resident weights (2 buffers)
           + 2 * cout_p * 4                     # bias
           + th * wdt * 9 * cin * 2             # im2col patch
           + th * wdt * tn * 4                  # f32 accumulator
           + (2 << 20))                         # headroom
    vmem_limit = int(min(vmem_cap * 3 // 4, max(32 << 20, 2 * est)))

    # ---- input prep: NCHW -> NHWC bf16, one pad (conv halo + row padding),
    # overlapping (th+2)-row windows so plain Blocked BlockSpecs can stream
    # them (only (th+2)/th HBM duplication vs 9x for an HBM im2col). ----
    x = jnp.transpose(x_nchw, (0, 2, 3, 1)).astype(jnp.bfloat16)
    xp = jnp.pad(x, ((0, 0), (1, 1 + h_pad - h), (1, 1), (0, 0)))
    xw = jnp.stack([xp[:, i * th:i * th + th + 2] for i in range(n_h)], axis=1)
    # xw: (N, n_h, th+2, W+2, Cin)

    kernel = functools.partial(_bcb_kernel, th=th, wo=wdt, cin=cin)
    out = pl.pallas_call(
        kernel,
        out_shape=jax.ShapeDtypeStruct((n, n_h, th * wdt, cout_p), jnp.bfloat16),
        # cout-tile axis SLOWEST -> weight/bias blocks stay VMEM-resident.
        grid=(n_co, n, n_h),
        in_specs=[
            pl.BlockSpec((None, None, th + 2, wdt + 2, cin),
                         lambda ci, bi, ri: (bi, ri, 0, 0, 0)),
            pl.BlockSpec((9 * cin, tn), lambda ci, bi, ri: (0, ci)),
            pl.BlockSpec((1, tn), lambda ci, bi, ri: (0, ci)),
        ],
        out_specs=pl.BlockSpec((None, None, th * wdt, tn),
                               lambda ci, bi, ri: (bi, ri, 0, ci)),
        compiler_params=pltpu.CompilerParams(
            dimension_semantics=("parallel", "parallel", "parallel"),
            vmem_limit_bytes=vmem_limit),
    )(xw, w9, b2)

    # (N, n_h, th*W, Cp) -> (N, Hpad, W, Cp): pure row-major reshape (free).
    out = out.reshape(n, h_pad, wdt, cout_p)[:, :h, :, :cout]
    return jnp.transpose(out, (0, 3, 1, 2)).astype(x_nchw.dtype)   # NCHW


# --------------------------- pure-JAX reference ------------------------------

def bcb_reference(params, x_nchw):
    x = jnp.transpose(x_nchw, (0, 2, 3, 1)).astype(jnp.float32)
    w_hwio = jnp.transpose(params["conv_w"], (2, 3, 1, 0)).astype(jnp.float32)
    y = jax.lax.conv_general_dilated(
        x, w_hwio, window_strides=(1, 1), padding="SAME",
        dimension_numbers=("NHWC", "HWIO", "NHWC"))
    y = y + params["conv_b"]
    s = params["bn_gamma"] / jnp.sqrt(params["bn_var"] + BN_EPS)
    y = (y - params["bn_mean"]) * s + params["bn_beta"]
    y = y * jax.nn.sigmoid(y)
    return jnp.transpose(y, (0, 3, 1, 2))


# ----------------------------------- main ------------------------------------

if __name__ == "__main__":
    root = jax.random.PRNGKey(0)
    kx, kw, kb, kg, kbt, km, kv = jax.random.split(root, 7)

    c = 64
    x = jax.random.normal(kx, (2, c, 16, 16), jnp.float32)
    params = {
        "conv_w": jax.random.normal(kw, (c, c, 3, 3), jnp.float32)
                  / jnp.sqrt(9.0 * c),
        "conv_b": 0.02 * jax.random.normal(kb, (c,), jnp.float32),
        "bn_gamma": 1.0 + 0.1 * jax.random.normal(kg, (c,), jnp.float32),
        "bn_beta": 0.1 * jax.random.normal(kbt, (c,), jnp.float32),
        "bn_mean": 0.1 * jax.random.normal(km, (c,), jnp.float32),
        "bn_var": 1.0 + jax.random.uniform(kv, (c,), jnp.float32),
    }

    fwd = jax.jit(bcb_forward)
    out = fwd(params, x)
    jax.block_until_ready(out)

    assert out.shape == (2, c, 16, 16), out.shape
    assert bool(jnp.isfinite(out).all())

    ref = bcb_reference(params, x)
    max_err = float(jnp.max(jnp.abs(out.astype(jnp.float32) - ref)))
    # bf16 matmul operands + bf16 output with f32 accumulation vs f32 reference.
    assert max_err < 1e-1, max_err

    print("KERNEL_OK")
</pallas_src>

<mosaic_0001>
module attributes {stable_mosaic.version = 11 : i64} {
  func.func @_bcb_kernel(%arg0: i32, %arg1: i32, %arg2: i32, %arg3: memref<1x1x18x18x64xbf16, #tpu.memory_space<vmem>>, %arg4: memref<576x128xbf16, #tpu.memory_space<vmem>>, %arg5: memref<1x128xf32, #tpu.memory_space<vmem>>, %arg6: memref<1x1x256x128xbf16, #tpu.memory_space<vmem>>) attributes {dimension_semantics = [#tpu.dimension_semantics<parallel>, #tpu.dimension_semantics<parallel>, #tpu.dimension_semantics<parallel>], iteration_bounds = array<i64: 1, 2, 1>, scalar_prefetch = 0 : i64, scratch_operands = 0 : i64, tpu.core_type = #tpu.core_type<tc>, window_params = [{transform_indices = @transform_0, window_bounds = array<i64: 1, 1, 18, 18, 64>}, {transform_indices = @transform_1, window_bounds = array<i64: 576, 128>}, {transform_indices = @transform_2, window_bounds = array<i64: 1, 128>}, {transform_indices = @transform_3, window_bounds = array<i64: 1, 1, 256, 128>}]} {
    %c0 = arith.constant 0 : index
    %c0_0 = arith.constant 0 : index
    %c0_1 = arith.constant 0 : index
    %c0_2 = arith.constant 0 : index
    %c0_3 = arith.constant 0 : index
    %0 = vector.load %arg3[%c0, %c0_0, %c0_1, %c0_2, %c0_3] : memref<1x1x18x18x64xbf16, #tpu.memory_space<vmem>>, vector<1x1x18x18x64xbf16>
    %1 = vector.shape_cast %0 : vector<1x1x18x18x64xbf16> to vector<18x18x64xbf16>
    %2 = vector.extract_strided_slice %1 {offsets = [0, 0, 0], sizes = [16, 16, 64], strides = [1, 1, 1]} : vector<18x18x64xbf16> to vector<16x16x64xbf16>
    %3 = vector.extract_strided_slice %1 {offsets = [0, 1, 0], sizes = [16, 16, 64], strides = [1, 1, 1]} : vector<18x18x64xbf16> to vector<16x16x64xbf16>
    %4 = vector.extract_strided_slice %1 {offsets = [0, 2, 0], sizes = [16, 16, 64], strides = [1, 1, 1]} : vector<18x18x64xbf16> to vector<16x16x64xbf16>
    %5 = vector.extract_strided_slice %1 {offsets = [1, 0, 0], sizes = [16, 16, 64], strides = [1, 1, 1]} : vector<18x18x64xbf16> to vector<16x16x64xbf16>
    %6 = vector.extract_strided_slice %1 {offsets = [1, 1, 0], sizes = [16, 16, 64], strides = [1, 1, 1]} : vector<18x18x64xbf16> to vector<16x16x64xbf16>
    %7 = vector.extract_strided_slice %1 {offsets = [1, 2, 0], sizes = [16, 16, 64], strides = [1, 1, 1]} : vector<18x18x64xbf16> to vector<16x16x64xbf16>
    %8 = vector.extract_strided_slice %1 {offsets = [2, 0, 0], sizes = [16, 16, 64], strides = [1, 1, 1]} : vector<18x18x64xbf16> to vector<16x16x64xbf16>
    %9 = vector.extract_strided_slice %1 {offsets = [2, 1, 0], sizes = [16, 16, 64], strides = [1, 1, 1]} : vector<18x18x64xbf16> to vector<16x16x64xbf16>
    %10 = vector.extract_strided_slice %1 {offsets = [2, 2, 0], sizes = [16, 16, 64], strides = [1, 1, 1]} : vector<18x18x64xbf16> to vector<16x16x64xbf16>
    %11 = tpu.concatenate %2, %3, %4, %5, %6, %7, %8, %9, %10 in 2 : vector<16x16x64xbf16>, vector<16x16x64xbf16>, vector<16x16x64xbf16>, vector<16x16x64xbf16>, vector<16x16x64xbf16>, vector<16x16x64xbf16>, vector<16x16x64xbf16>, vector<16x16x64xbf16>, vector<16x16x64xbf16> -> vector<16x16x576xbf16>
    %12 = vector.shape_cast %11 : vector<16x16x576xbf16> to vector<256x576xbf16>
    %c0_4 = arith.constant 0 : index
    %c0_5 = arith.constant 0 : index
    %13 = vector.load %arg4[%c0_4, %c0_5] : memref<576x128xbf16, #tpu.memory_space<vmem>>, vector<576x128xbf16>
    %cst = arith.constant dense<0.000000e+00> : vector<256x128xf32>
    %14 = tpu.matmul %12, %13, %cst {dimension_numbers = #tpu.dot_dimension_numbers<[1], [0], [0], [1], [0, 0, 1, 1], [], []>} : vector<256x576xbf16>, vector<576x128xbf16>, vector<256x128xf32> -> vector<256x128xf32>
    %c0_6 = arith.constant 0 : index
    %c0_7 = arith.constant 0 : index
    %15 = vector.load %arg5[%c0_6, %c0_7] : memref<1x128xf32, #tpu.memory_space<vmem>>, vector<1x128xf32>
    %16 = vector.broadcast %15 : vector<1x128xf32> to vector<256x128xf32>
    %17 = arith.addf %14, %16 : vector<256x128xf32>
    %18 = arith.negf %17 : vector<256x128xf32>
    %19 = math.exp %18 : vector<256x128xf32>
    %cst_8 = arith.constant 1.000000e+00 : f32
    %20 = vector.broadcast %cst_8 : f32 to vector<256x128xf32>
    %21 = arith.addf %20, %19 : vector<256x128xf32>
    %22 = arith.divf %20, %21 : vector<256x128xf32>
    %23 = arith.mulf %17, %22 : vector<256x128xf32>
    %24 = arith.truncf %23 : vector<256x128xf32> to vector<256x128xbf16>
    %c0_9 = arith.constant 0 : index
    %c0_10 = arith.constant 0 : index
    %c0_11 = arith.constant 0 : index
    %c0_12 = arith.constant 0 : index
    %25 = vector.load %arg6[%c0_9, %c0_10, %c0_11, %c0_12] : memref<1x1x256x128xbf16, #tpu.memory_space<vmem>>, vector<1x1x256x128xbf16>
    %26 = vector.shape_cast %25 : vector<1x1x256x128xbf16> to vector<256x128xbf16>
    %27 = vector.shape_cast %24 : vector<256x128xbf16> to vector<1x1x256x128xbf16>
    tpu.vector_store %arg6[%c0_9, %c0_10, %c0_11, %c0_12], %27 {strides = array<i32>} : memref<1x1x256x128xbf16, #tpu.memory_space<vmem>>, vector<1x1x256x128xbf16>,
    return
  }
  func.func @transform_0(%arg0: i32, %arg1: i32, %arg2: i32) -> (i32, i32, i32, i32, i32) {
    %c0_i32 = arith.constant 0 : i32
    %c0_i32_0 = arith.constant 0 : i32
    %c0_i32_1 = arith.constant 0 : i32
    %c0_i32_2 = arith.constant 0 : i32
    return %arg1, %arg2, %c0_i32, %c0_i32_0, %c0_i32_1 : i32, i32, i32, i32, i32
  }
  func.func @transform_1(%arg0: i32, %arg1: i32, %arg2: i32) -> (i32, i32) {
    %c0_i32 = arith.constant 0 : i32
    %c0_i32_0 = arith.constant 0 : i32
    return %c0_i32, %arg0 : i32, i32
  }
  func.func @transform_2(%arg0: i32, %arg1: i32, %arg2: i32) -> (i32, i32) {
    %c0_i32 = arith.constant 0 : i32
    %c0_i32_0 = arith.constant 0 : i32
    return %c0_i32, %arg0 : i32, i32
  }
  func.func @transform_3(%arg0: i32, %arg1: i32, %arg2: i32) -> (i32, i32, i32, i32) {
    %c0_i32 = arith.constant 0 : i32
    %c0_i32_0 = arith.constant 0 : i32
    return %arg1, %arg2, %c0_i32, %arg0 : i32, i32, i32, i32
  }
}

</mosaic_0001>

<bundles_post_ra>
// kernel: bcb_forward.1
= control target key start
LH: loop header
LB: loop body
LE: loop exit
PB: predicated region body
PF: predicated region fallthrough
CT: control target
= control target key end

     0   :  { %s3200_s12 = smov 0   ;;  %s3202_s13 = smov 0   ;;  %s4334_s0 = inlined_call_operand.vmem [shape: bf16[2,1,18,18,64], index: 0, kind: input, shape index: {}]   ;;  %s4335_s1 = inlined_call_operand.vmem [shape: bf16[576,128], index: 1, kind: input, shape index: {}]   ;;  %s4336_s2 = inlined_call_operand.vmem [shape: f32[1,128], index: 2, kind: input, shape index: {}]   ;;  %s4337_s3 = inlined_call_operand.vmem [shape: bf16[2,1,256,128], index: 3, kind: output, shape index: {}]  }
   0x1   :  { %s3204_s14 = smov 0  }
   0x2 LB: > { %s28_s15 = sadd.s32 1, %s3173_s13  ;;  %p2342_p0 = scmp.ge.s32.totalorder %s3177_s14, 1  ;;  %s3177_s14 = sphi %s3204_s14, %s13_s14   ;;  %s3173_s13 = sphi %s3202_s13, %s4384_s13   ;;  %s3169_s12 = sphi %s3200_s12, %s4383_s12  }
   0x3   : > { %p30_p1 = scmp.ge.s32.totalorder %s28_s15, 2  ;;  %p183_p2 = scmp.lt.s32.totalorder %s3177_s14, 3 }
   0x5   : > { %s4386_s15 = smov (%p30_p1, %s28_s15), 0  ;;  %p184_p3 = pnand %p2342_p0, %p183_p2 }
   0x7   : > { %187 = sbr.rel (%p184_p3) target bundleno = 538 (0x21a), region = 32 }
   0xc   : > { %p225_p4 = scmp.lt.s32.totalorder %s3169_s12, 1  ;;  %v2987_v0 = vld [vmem:[%s4335_s1 + $0x78] sm:$0xff]   ;;  %v2989_v2 = vld [vmem:[%s4335_s1 + $0x70] sm:$0xff]   ;;  %v2992_v4 = vld [vmem:[%s4335_s1 + $0x68] sm:$0xff]   ;;  %vm436_vm0 = vsmask.f32 7424 }
   0xd   : > { %2913 = vmatprep.subr.bf16.mxu1 %v2987_v0  ;;  %2629 = vmatprep.subr.bf16.mxu0 %v2987_v0  ;;  %v2988_v1 = vld [vmem:[%s4335_s1 + $0x38] sm:$0xff]   ;;  %v2990_v3 = vld [vmem:[%s4335_s1 + $0x30] sm:$0xff]   ;;  %v2993_v5 = vld [vmem:[%s4335_s1 + $0x28] sm:$0xff]   ;;  %s3179_s5 = smov 64   ;;  %vm661_vm1 = vcmask 1046528   ;;  %vm824_vm2 = vcmask 523264  }
   0xe   : > { %s4388_s12 = smov (!%p225_p4, %s3169_s12), 1  ;;  %2921 = vmatpush3.bf16.msra.mxu1 %v2988_v1  ;;  %2630 = vmatpush3.bf16.msra.mxu0 %v2988_v1 }
   0xf   : > { %s2929_s22 = smul.u32 216, %s4388_s12  ;;  %2914 = vmatprep.subr.bf16.mxu1 %v2989_v2  ;;  %2631 = vmatprep.subr.bf16.mxu0 %v2989_v2  ;;  %s2501_s26 = sshll.u32 %s4388_s12, 7 }
  0x10   : > { %s4228_s28 = scalar_lea.vmem %s4337_s3, %s2501_s26 }
  0x11   : > { %s3239_s29 = scalar_lea.vmem %s4334_s0, %s2929_s22 }
  0x12   : > { %v3245_v6 = vld [vmem:[%s3239_s29 + $0x9c] sm:$0xff]   ;;  %v3248_v7 = vld [vmem:[%s3239_s29 + $0xc] sm:$0xff]   ;;  %2922 = vmatpush3.bf16.msra.mxu1 %v2990_v3  ;;  %2632 = vmatpush3.bf16.msra.mxu0 %v2990_v3  ;;  %v3258_v9 = vld [vmem:[%s3239_s29 + $0x98] ss:$0 sps:$4 sm:$0x11]  }
  0x13   : > { %739 = vrot.lane.b32.xlu0 %v3245_v6, %s3179_s5  ;;  %2915 = vmatprep.subr.bf16.mxu1 %v2992_v4  ;;  %v3255_v8 = vld [vmem:[%s3239_s29 + $0x90] sm:$0xff]   ;;  %v3261_v10 = vld [vmem:[%s3239_s29] sm:$0xff]   ;;  %v589_v13 = vshll.u32 %v3258_v9, 16  ;;  %v3267_v14 = vld [vmem:[%s3239_s29 + $0x8] ss:$0 sps:$4 sm:$0x11]  }
  0x14   : > { %715 = vrot.lane.b32.xlu1 %v3248_v7, %s3179_s5  ;;  %2633 = vmatprep.subr.bf16.mxu0 %v2992_v4  ;;  %v582_v11 = vshrl.u32 %v3255_v8, 16  ;;  %v584_v12 = vshll.u32 %v3255_v8, 16  ;;  %v438_v15 = vshrl.u32 %v3261_v10, 16  ;;  %v440_v16 = vshll.u32 %v3261_v10, 16  ;;  %v3284_v32 = vld [vmem:[%s3239_s29 + $0xa8] sm:$0xff]   ;;  %v3293_v37 = vld [vmem:[%s3239_s29 + $0x18] sm:$0xff]  }
  0x15   : > { %v591_v18 = vrot.slane %v589_v13, 1  ;;  %v445_v19 = vshll.u32 %v3267_v14, 16  ;;  %v3273_v21 = vld [vmem:[%s3239_s29 + $0xa4] ss:$0 sps:$4 sm:$0x11]   ;;  %v594_v22 = vshrl.u32 %v3245_v6, 16 }
  0x16   : > { %2923 = vmatpush3.bf16.msra.mxu1 %v2993_v5  ;;  %2634 = vmatpush3.bf16.msra.mxu0 %v2993_v5  ;;  %v586_v17 = vrot.slane %v584_v12, 1  ;;  %v442_v20 = vrot.slane %v440_v16, 1  ;;  %v596_v23 = vshll.u32 %v3245_v6, 16  ;;  %v450_v26 = vshrl.u32 %v3248_v7, 16  ;;  %v3312_v49 = vld [vmem:[%s3239_s29 + $0xb4] sm:$0xff]   ;;  %v3329_v59 = vld [vmem:[%s3239_s29 + $0x24] sm:$0xff]  }
  0x17   : > { %v447_v25 = vrot.slane %v445_v19, 1  ;;  %v601_v29 = vshll.u32 %v3273_v21, 16  ;;  %v452_v30 = vshll.u32 %v3248_v7, 16  ;;  %v3287_v33 = vld [vmem:[%s3239_s29 + $0x14] ss:$0 sps:$4 sm:$0x11]  }
  0x18   : > { %v587_v24 = vor.u32 %v586_v17, %v582_v11  ;;  %v443_v27 = vor.u32 %v442_v20, %v438_v15  ;;  %v598_v28 = vrot.slane %v596_v23, 1  ;;  %v457_v39 = vshll.u32 %v3287_v33, 16  ;;  %v3298_v40 = vld [vmem:[%s3239_s29 + $0xb0] ss:$0 sps:$4 sm:$0x11]   ;;  %v3357_v17 = vld [vmem:[%s3239_s29 + $0xc0] sm:$0xff]  }
  0x19   : > { %v603_v36 = vrot.slane %v601_v29, 1  ;;  %v454_v38 = vrot.slane %v452_v30, 1  ;;  %v606_v41 = vshrl.u32 %v3284_v32, 16  ;;  %v608_v42 = vshll.u32 %v3284_v32, 16  ;;  %v3352_v16 = vld [vmem:[%s3239_s29 + $0x30] sm:$0xff]  }
  0x1a   : > { %v3281_v31 = vsel %vm436_vm0, %v587_v24, %v591_v18  ;;  %v448_v34 = vsel %vm436_vm0, %v443_v27, %v447_v25  ;;  %v599_v35 = vor.u32 %v598_v28, %v594_v22  ;;  %v459_v45 = vrot.slane %v457_v39, 1  ;;  %v3307_v48 = vld [vmem:[%s3239_s29 + $0x20] ss:$0 sps:$4 sm:$0x11]  }
  0x1b   : > { %653 = vrot.lane.b32.xlu0 %v3281_v31, %s3179_s5  ;;  %629 = vrot.lane.b32.xlu1 %v448_v34, %s3179_s5  ;;  %v455_v44 = vor.u32 %v454_v38, %v450_v26  ;;  %v610_v46 = vrot.slane %v608_v42, 1  ;;  %v613_v47 = vshll.u32 %v3298_v40, 16  ;;  %v464_v50 = vshll.u32 %v3293_v37, 16  ;;  %v3323_v57 = vld [vmem:[%s3239_s29 + $0xbc] ss:$0 sps:$4 sm:$0x11]  }
  0x1c   : > { %v3303_v43 = vsel %vm436_vm0, %v599_v35, %v603_v36  ;;  %v462_v52 = vshrl.u32 %v3293_v37, 16  ;;  %v469_v53 = vshll.u32 %v3307_v48, 16  ;;  %v620_v58 = vshll.u32 %v3312_v49, 16  ;;  %v3335_v0 = vld [vmem:[%s3239_s29 + $0x2c] ss:$0 sps:$4 sm:$0x11]  }
  0x1d   : > { %v3318_v51 = vsel %vm436_vm0, %v455_v44, %v459_v45  ;;  %v611_v54 = vor.u32 %v610_v46, %v606_v41  ;;  %v615_v55 = vrot.slane %v613_v47, 1  ;;  %v466_v56 = vrot.slane %v464_v50, 1  ;;  %v3362_v18 = vld [vmem:[%s3239_s29 + $0x38] ss:$0 sps:$4 sm:$0x11]   ;;  %v3373_v26 = vld [vmem:[%s3239_s29 + $0x3c] sm:$0xff]  }
  0x1e   : > { %v471_v61 = vrot.slane %v469_v53, 1  ;;  %v618_v62 = vshrl.u32 %v3312_v49, 16  ;;  %v622_v63 = vrot.slane %v620_v58, 1  ;;  %v625_v2 = vshll.u32 %v3323_v57, 16  ;;  %v3396_v42 = vld [vmem:[%s3239_s29 + $0x48] sm:$0xff]   ;;  %v3417_v58 = vld [vmem:[%s3239_s29 + $0x54] sm:$0xff]  }
  0x1f   : > { %741 = vrot.lane.b32.xlu0 %v3284_v32, %s3179_s5  ;;  %655 = vrot.lane.b32.xlu1 %v3303_v43, %s3179_s5  ;;  %v467_v60 = vor.u32 %v466_v56, %v462_v52  ;;  %v3338_v1 = vsel %vm436_vm0, %v611_v54, %v615_v55  ;;  %v476_v3 = vshll.u32 %v3329_v59, 16  ;;  %v474_v5 = vshrl.u32 %v3329_v59, 16  ;;  %v3383_v34 = vld [vmem:[%s3239_s29 + $0x44] ss:$0 sps:$4 sm:$0x11]  }
  0x20   : > { %4341 = vst [vmem:[#allocation2_spill] sm:$0xff] %v3338_v1  ;;  %v623_v11 = vor.u32 %v622_v63, %v618_v62  ;;  %v627_v12 = vrot.slane %v625_v2, 1  ;;  %v481_v15 = vshll.u32 %v3335_v0, 16  ;;  %v488_v19 = vshll.u32 %v3352_v16, 16  ;;  %v2994_v62 = vld [vmem:[%s4335_s1 + $0x60] sm:$0xff]  }
  0x21   : > { %v3347_v4 = vsel %vm436_vm0, %v467_v60, %v471_v61  ;;  %v478_v13 = vrot.slane %v476_v3, 1  ;;  %v665_v24 = vrot.slane %v3248_v7, 1  ;;  %v666_v25 = vrot.slane %v3287_v33, 1  ;;  %v3403_v47 = vld [vmem:[%s3239_s29 + $0x50] ss:$0 sps:$4 sm:$0x11]   ;;  %2916 = vmatprep.subr.bf16.mxu1 %v2994_v62  ;;  %2635 = vmatprep.subr.bf16.mxu0 %v2994_v62 }
  0x22   : > { %v3366_v20 = vsel %vm436_vm0, %v623_v11, %v627_v12  ;;  %v483_v23 = vrot.slane %v481_v15, 1  ;;  %v486_v27 = vshrl.u32 %v3352_v16, 16  ;;  %v490_v28 = vrot.slane %v488_v19, 1  ;;  %v2996_v3 = vld [vmem:[%s4335_s1 + $0x58] sm:$0xff]   ;;  %v2998_v15 = vld [vmem:[%s4335_s1 + $0x50] sm:$0xff]  }
  0x23   : > { %717 = vrot.lane.b32.xlu0 %v3293_v37, %s3179_s5  ;;  %631 = vrot.lane.b32.xlu1 %v3318_v51, %s3179_s5  ;;  %4342 = vst [vmem:[#allocation3_spill] sm:$0xff] %v3366_v20  ;;  %v479_v22 = vor.u32 %v478_v13, %v474_v5  ;;  %v493_v29 = vshll.u32 %v3362_v18, 16  ;;  %v500_v35 = vshll.u32 %v3373_v26, 16  ;;  %v3389_v33 = vsel %vm661_vm1, %v665_v24, %v666_v25  ;;  %v3436_v5 = vld [vmem:[%s3239_s29 + $0x5c] ss:$0 sps:$4 sm:$0x11]  }
  0x24   : > { %v491_v36 = vor.u32 %v490_v28, %v486_v27  ;;  %v668_v39 = vrot.slane %v3293_v37, 1  ;;  %v669_v41 = vrot.slane %v3307_v48, 1  ;;  %v498_v44 = vshrl.u32 %v3373_v26, 16  ;;  %v2997_v11 = vld [vmem:[%s4335_s1 + $0x18] sm:$0xff]   ;;  %v3458_v27 = vld [vmem:[%s3239_s29 + $0x60] sm:$0xff]  }
  0x25   : > { %v3380_v30 = vsel %vm436_vm0, %v479_v22, %v483_v23  ;;  %v495_v38 = vrot.slane %v493_v29, 1  ;;  %v502_v45 = vrot.slane %v500_v35, 1  ;;  %v505_v46 = vshll.u32 %v3383_v34, 16  ;;  %v3465_v35 = vld [vmem:[%s3239_s29 + $0x68] ss:$0 sps:$4 sm:$0x11]  }
  0x26   : > { %v512_v50 = vshll.u32 %v3396_v42, 16  ;;  %v3412_v48 = vsel %vm661_vm1, %v668_v39, %v669_v41  ;;  %v671_v55 = vrot.slane %v3329_v59, 1  ;;  %v672_v56 = vrot.slane %v3335_v0, 1  ;;  %v2995_v0 = vld [vmem:[%s4335_s1 + $0x20] sm:$0xff]  }
  0x27   : > { %743 = vrot.lane.b32.xlu0 %v3312_v49, %s3179_s5  ;;  %657 = vrot.lane.b32.xlu1 %v3338_v1, %s3179_s5  ;;  %v3409_v52 = vsel %vm436_vm0, %v491_v36, %v495_v38  ;;  %v503_v53 = vor.u32 %v502_v45, %v498_v44  ;;  %v507_v54 = vrot.slane %v505_v46, 1  ;;  %v510_v60 = vshrl.u32 %v3396_v42, 16  ;;  %v3000_v36 = vld [vmem:[%s4335_s1 + $0x48] sm:$0xff]  }
  0x28   : > { %v674_v61 = vrot.slane %v3352_v16, 1  ;;  %v514_v63 = vrot.slane %v512_v50, 1  ;;  %v517_v2 = vshll.u32 %v3403_v47, 16  ;;  %v524_v13 = vshll.u32 %v3417_v58, 16  ;;  %2924 = vmatpush3.bf16.msra.mxu1 %v2995_v0  ;;  %2636 = vmatpush3.bf16.msra.mxu0 %v2995_v0  ;;  %v3001_v45 = vld [vmem:[%s4335_s1 + $0x8] sm:$0xff]  }
  0x29   : > { %v3442_v12 = vsel %vm436_vm0, %v503_v53, %v507_v54  ;;  %2917 = vmatprep.subr.bf16.mxu1 %v2996_v3  ;;  %v675_v19 = vrot.slane %v3362_v18, 1  ;;  %v522_v22 = vshrl.u32 %v3417_v58, 16  ;;  %2637 = vmatprep.subr.bf16.mxu0 %v2996_v3  ;;  %v3455_v23 = vsel %vm661_vm1, %v671_v55, %v672_v56  ;;  %v2999_v18 = vld [vmem:[%s4335_s1 + $0x10] sm:$0xff]   ;;  %v3002_v54 = vld [vmem:[%s4335_s1 + $0x40] sm:$0xff]   ;;  %v3004_v3 = vld [vmem:[%s4335_s1 + $0xf8] sm:$0xff]  }
  0x2a   : > { %v515_v24 = vor.u32 %v514_v63, %v510_v60  ;;  %v519_v25 = vrot.slane %v517_v2, 1  ;;  %v529_v28 = vshll.u32 %v3436_v5, 16  ;;  %v526_v29 = vrot.slane %v524_v13, 1  ;;  %v3492_v55 = vld [vmem:[%s3239_s29 + $0x6c] sm:$0xff]   ;;  %v3003_v2 = vld [vmem:[%s4335_s1] sm:$0xff]   ;;  %v3518_v13 = vld [vmem:[%s4335_s1 + $0x118] sm:$0xff]  }
  0x2b   : > { %719 = vrot.lane.b32.xlu0 %v3329_v59, %s3179_s5  ;;  %633 = vrot.lane.b32.xlu1 %v3347_v4, %s3179_s5  ;;  %v677_v41 = vrot.slane %v3373_v26, 1  ;;  %v536_v44 = vshll.u32 %v3458_v27, 16  ;;  %v3483_v46 = vsel %vm661_vm1, %v674_v61, %v675_v19  ;;  %v678_v53 = vrot.slane %v3383_v34, 1  ;;  %v3496_v60 = vld [vmem:[%s3239_s29 + $0x74] ss:$0 sps:$4 sm:$0x11]  }
  0x2c   : > { %2925 = vmatpush3.bf16.msra.mxu1 %v2997_v11  ;;  %2638 = vmatpush3.bf16.msra.mxu0 %v2997_v11  ;;  %v3475_v38 = vsel %vm436_vm0, %v515_v24, %v519_v25  ;;  %v531_v39 = vrot.slane %v529_v28, 1  ;;  %v527_v50 = vor.u32 %v526_v29, %v522_v22  ;;  %v534_v56 = vshrl.u32 %v3458_v27, 16  ;;  %v2986_v28 = vld [vmem:[%s3239_s29 + $0x80] ss:$0 sps:$4 sm:$0x11]   ;;  %v3529_v29 = vld [vmem:[%s3239_s29 + $0x78] sm:$0xff]  }
  0x2d   : > { %2918 = vmatprep.subr.bf16.mxu1 %v2998_v15  ;;  %2639 = vmatprep.subr.bf16.mxu0 %v2998_v15  ;;  %v538_v34 = vrot.slane %v536_v44, 1  ;;  %v541_v61 = vshll.u32 %v3465_v35, 16  ;;  %v548_v63 = vshll.u32 %v3492_v55, 16  ;;  %v680_v0 = vrot.slane %v3396_v42, 1 }
  0x2e   : > { %v3502_v62 = vsel %vm436_vm0, %v527_v50, %v531_v39  ;;  %v681_v11 = vrot.slane %v3403_v47, 1  ;;  %v3523_v15 = vsel %vm661_vm1, %v677_v41, %v678_v53  ;;  %v546_v24 = vshrl.u32 %v3492_v55, 16 }
  0x2f   : > { %745 = vrot.lane.b32.xlu0 %v3357_v17, %s3179_s5  ;;  %659 = vrot.lane.b32.xlu1 %v3366_v20, %s3179_s5  ;;  %v539_v19 = vor.u32 %v538_v34, %v534_v56  ;;  %v543_v22 = vrot.slane %v541_v61, 1  ;;  %v550_v25 = vrot.slane %v548_v63, 1  ;;  %v553_v47 = vshll.u32 %v3496_v60, 16  ;;  %v2991_v61 = vld [vmem:[%s3239_s29 + $0x8c] ss:$0 sps:$4 sm:$0x11]  }
  0x30   : > { %2926 = vmatpush3.bf16.msra.mxu1 %v2999_v18  ;;  %2640 = vmatpush3.bf16.msra.mxu0 %v2999_v18  ;;  %v3541_v39 = vsel %vm661_vm1, %v680_v0, %v681_v11  ;;  %v683_v50 = vrot.slane %v3417_v58, 1  ;;  %v684_v53 = vrot.slane %v3436_v5, 1  ;;  %v565_v56 = vshll.u32 %v2986_v28, 16 }
  0x31   : > { %2919 = vmatprep.subr.bf16.mxu1 %v3000_v36  ;;  %2641 = vmatprep.subr.bf16.mxu0 %v3000_v36  ;;  %v3537_v18 = vsel %vm436_vm0, %v539_v19, %v543_v22  ;;  %v560_v36 = vshll.u32 %v3529_v29, 16  ;;  %v551_v41 = vor.u32 %v550_v25, %v546_v24  ;;  %v555_v44 = vrot.slane %v553_v47, 1 }
  0x32   : > { %v686_v0 = vrot.slane %v3458_v27, 1  ;;  %v3562_v5 = vsel %vm661_vm1, %v683_v50, %v684_v53  ;;  %v567_v11 = vrot.slane %v565_v56, 1  ;;  %v687_v19 = vrot.slane %v3465_v35, 1 }
  0x33   : > { %721 = vrot.lane.b32.xlu0 %v3352_v16, %s3179_s5  ;;  %635 = vrot.lane.b32.xlu1 %v3380_v30, %s3179_s5  ;;  %v562_v34 = vrot.slane %v560_v36, 1  ;;  %v3555_v63 = vsel %vm436_vm0, %v551_v41, %v555_v44  ;;  %v577_v25 = vshll.u32 %v2991_v61, 16  ;;  %v689_v44 = vrot.slane %v3492_v55, 1 }
  0x34   : > { %2927 = vmatpush3.bf16.msra.mxu1 %v3001_v45  ;;  %2642 = vmatpush3.bf16.msra.mxu0 %v3001_v45  ;;  %v3544_v45 = vld [vmem:[%s3239_s29 + $0x84] sm:$0xff]   ;;  %v3576_v36 = vsel %vm661_vm1, %v686_v0, %v687_v19  ;;  %v690_v50 = vrot.slane %v3496_v60, 1  ;;  %v693_v56 = vrot.slane %v2986_v28, 1  ;;  %v696_v0 = vrot.slane %v2991_v61, 1 }
  0x35   : > { %2920 = vmatprep.subr.bf16.mxu1 %v3002_v54  ;;  %2643 = vmatprep.subr.bf16.mxu0 %v3002_v54  ;;  %v558_v54 = vshrl.u32 %v3529_v29, 16  ;;  %v570_v22 = vshrl.u32 %v3544_v45, 16  ;;  %v579_v35 = vrot.slane %v577_v25, 1  ;;  %v695_v60 = vrot.slane %v3544_v45, 1 }
  0x36   : > { %v698_v19 = vrot.slane %v3255_v8, 1 }
  0x37   : > { %765 = vrot.lane.b32.xlu0 %v3389_v33, %s3179_s5  ;;  %723 = vrot.lane.b32.xlu1 %v3373_v26, %s3179_s5  ;;  %v3612_v61 = vsel %vm661_vm1, %v695_v60, %v696_v0 }
  0x38   : > { %2928 = vmatpush3.bf16.msra.mxu1 %v3003_v2  ;;  %2644 = vmatpush3.bf16.msra.mxu0 %v3003_v2  ;;  %v572_v2 = vshll.u32 %v3544_v45, 16 }
  0x39   : > { %2741 = vmatprep.subr.bf16.mxu1 %v3004_v3  ;;  %2873 = vmatprep.subr.bf16.mxu0 %v3518_v13  ;;  %v563_v3 = vor.u32 %v562_v34, %v558_v54  ;;  %v692_v54 = vrot.slane %v3529_v29, 1  ;;  %v753_v34 = vshll.u32 %v3357_v17, 16 }
  0x3a   : > { %v574_v24 = vrot.slane %v572_v2, 1  ;;  %v3594_v2 = vsel %vm661_vm1, %v689_v44, %v690_v50  ;;  %v701_v50 = vrot.slane %v3245_v6, 1 }
  0x3b   : > { %637 = vrot.lane.b32.xlu0 %v3409_v52, %s3179_s5  ;;  %767 = vrot.lane.b32.xlu1 %v3412_v48, %s3179_s5  ;;  %v3573_v47 = vsel %vm436_vm0, %v563_v3, %v567_v11  ;;  %v3020_v3 = vld [vmem:[%s3239_s29 + $0xc8] ss:$0 sps:$4 sm:$0x11]   ;;  %v3599_v11 = vld [vmem:[%s3239_s29 + $0xcc] sm:$0xff]   ;;  %v3602_v28 = vsel %vm661_vm1, %v692_v54, %v693_v56  ;;  %v755_v25 = vrot.slane %v753_v34, 1  ;;  %v702_v54 = vrot.slane %v3273_v21, 1 }
  0x3c   : > { %v575_v41 = vor.u32 %v574_v24, %v570_v22  ;;  %v699_v22 = vrot.slane %v3258_v9, 1  ;;  %v751_v24 = vshrl.u32 %v3357_v17, 16  ;;  %v808_v44 = vshll.u32 %v3599_v11, 16 }
  0x3d   : > { %v704_v56 = vrot.slane %v3284_v32, 1  ;;  %v705_v34 = vrot.slane %v3298_v40, 1  ;;  %v806_v20 = vshrl.u32 %v3599_v11, 16  ;;  %v707_v40 = vrot.slane %v3312_v49, 1 }
  0x3e   : > { %v3585_v53 = vsel %vm436_vm0, %v575_v41, %v579_v35  ;;  %v758_v41 = vshll.u32 %v3020_v3, 16  ;;  %v3615_v35 = vld [vmem:[%s3239_s29 + $0xd4] ss:$0 sps:$4 sm:$0x11]   ;;  %v3621_v9 = vsel %vm661_vm1, %v698_v19, %v699_v22  ;;  %v756_v60 = vor.u32 %v755_v25, %v751_v24 }
  0x3f   : > { %725 = vrot.lane.b32.xlu0 %v3396_v42, %s3179_s5  ;;  %639 = vrot.lane.b32.xlu1 %v3442_v12, %s3179_s5  ;;  %4343 = vst [vmem:[#allocation4_spill] sm:$0xff] %v3615_v35  ;;  %v810_v1 = vrot.slane %v808_v44, 1  ;;  %v813_v21 = vshll.u32 %v3615_v35, 16  ;;  %v3632_v19 = vsel %vm661_vm1, %v701_v50, %v702_v54  ;;  %v3637_v22 = vsel %vm661_vm1, %v704_v56, %v705_v34 }
  0x40   : > { %v760_v0 = vrot.slane %v758_v41, 1  ;;  %v708_v24 = vrot.slane %v3323_v57, 1  ;;  %v762_v50 = vrot.slane %v3357_v17, 1  ;;  %v763_v54 = vrot.slane %v3020_v3, 1 }
  0x41   : > { %v811_v41 = vor.u32 %v810_v1, %v806_v20  ;;  %v815_v44 = vrot.slane %v813_v21, 1  ;;  %v662_v1 = vrot.slane %v3261_v10, 1  ;;  %v663_v20 = vrot.slane %v3267_v14, 1  ;;  %v3006_v14 = vld [vmem:[%s4335_s1 + $0xf0] sm:$0xff]  }
  0x42   : > { %v3644_v25 = vsel %vm436_vm0, %v756_v60, %v760_v0  ;;  %v3648_v35 = vsel %vm661_vm1, %v707_v40, %v708_v24  ;;  %v3656_v56 = vsel %vm661_vm1, %v762_v50, %v763_v54  ;;  %v3005_v40 = vld [vmem:[%s4335_s1 + $0xb8] sm:$0xff]   ;;  %v3021_v50 = vld [vmem:[%s4335_s1 + $0x110] sm:$0xff]  }
  0x43   : > { %769 = vrot.lane.b32.xlu0 %v3455_v23, %s3179_s5  ;;  %727 = vrot.lane.b32.xlu1 %v3417_v58, %s3179_s5  ;;  %v816_v57 = vsel %vm436_vm0, %v811_v41, %v815_v44  ;;  %v664_v3 = vsel %vm661_vm1, %v662_v1, %v663_v20 }
  0x47   : > { %641 = vrot.lane.b32.xlu0 %v3475_v38, %s3179_s5  ;;  %771 = vrot.lane.b32.xlu1 %v3483_v46, %s3179_s5 }
  0x4b   : > { %729 = vrot.lane.b32.xlu0 %v3458_v27, %s3179_s5  ;;  %643 = vrot.lane.b32.xlu1 %v3502_v62, %s3179_s5 }
  0x4f   : > { %773 = vrot.lane.b32.xlu0 %v3523_v15, %s3179_s5  ;;  %731 = vrot.lane.b32.xlu1 %v3492_v55, %s3179_s5 }
  0x53   : > { %645 = vrot.lane.b32.xlu0 %v3537_v18, %s3179_s5  ;;  %775 = vrot.lane.b32.xlu1 %v3541_v39, %s3179_s5 }
  0x57   : > { %733 = vrot.lane.b32.xlu0 %v3529_v29, %s3179_s5  ;;  %647 = vrot.lane.b32.xlu1 %v3555_v63, %s3179_s5 }
  0x5b   : > { %777 = vrot.lane.b32.xlu0 %v3562_v5, %s3179_s5  ;;  %735 = vrot.lane.b32.xlu1 %v3544_v45, %s3179_s5 }
  0x5f   : > { %649 = vrot.lane.b32.xlu0 %v3573_v47, %s3179_s5  ;;  %779 = vrot.lane.b32.xlu1 %v3576_v36, %s3179_s5 }
  0x63   : > { %737 = vrot.lane.b32.xlu0 %v3255_v8, %s3179_s5  ;;  %651 = vrot.lane.b32.xlu1 %v3585_v53, %s3179_s5 }
  0x67   : > { %781 = vrot.lane.b32.xlu0 %v3594_v2, %s3179_s5  ;;  %783 = vrot.lane.b32.xlu1 %v3602_v28, %s3179_s5 }
  0x6b   : > { %785 = vrot.lane.b32.xlu0 %v3612_v61, %s3179_s5  ;;  %787 = vrot.lane.b32.xlu1 %v3621_v9, %s3179_s5 }
  0x6f   : > { %789 = vrot.lane.b32.xlu0 %v3632_v19, %s3179_s5  ;;  %791 = vrot.lane.b32.xlu1 %v3637_v22, %s3179_s5 }
  0x73   : > { %817 = vrot.lane.b32.xlu0 %v3644_v25, %s3179_s5  ;;  %793 = vrot.lane.b32.xlu1 %v3648_v35, %s3179_s5 }
  0x77   : > { %819 = vrot.lane.b32.xlu0 %v816_v57, %s3179_s5  ;;  %795 = vrot.lane.b32.xlu1 %v3656_v56, %s3179_s5  ;;  %v3008_v57 = vld [vmem:[%s4335_s1 + $0xb0] sm:$0xff]  }
  0x85   : > { %v740_v34 = vpop.permute.xlu0 %739 }
  0x86   : > { %v716_v60 = vpop.permute.xlu1 %715  ;;  %v923_v0 = vsel %vm824_vm2, %v3621_v9, %v740_v34 }
  0x87   : > { %1464 = vmatprep.mubr.bf16.mxu1 %v923_v0  ;;  %v875_v21 = vsel %vm824_vm2, %v664_v3, %v716_v60  ;;  %v3025_v3 = vld [vmem:[%s4335_s1 + $0x108] sm:$0xff]   ;;  %v3011_v0 = vld [vmem:[%s4335_s1 + $0xe0] sm:$0xff]  }
  0x88   : > { %1368 = vmatprep.mubr.bf16.mxu0 %v875_v21 }
  0x8d   : > { %v654_v24 = vpop.permute.xlu0 %653  ;;  %v630_v41 = vpop.permute.xlu1 %629 }
  0x8e   : > { %v3675_v44 = vsel %vm824_vm2, %v3255_v8, %v654_v24  ;;  %v826_v54 = vsel %vm824_vm2, %v3261_v10, %v630_v41  ;;  %v3009_v8 = vld [vmem:[%s4335_s1 + $0xe8] sm:$0xff]  }
  0x8f   : > { %1465 = vmatmul.mubr.bf16.vlgmr.msra.gmra.mxu1 %v3675_v44  ;;  %1369 = vmatmul.mubr.bf16.vlgmr.msra.gmra.mxu0 %v826_v54 }
  0x90   : > { %2742 = vmatpush3.bf16.msra.mxu1 %v3005_v40  ;;  %2874 = vmatpush3.bf16.msra.mxu0 %v3518_v13  ;;  %v3010_v13 = vld [vmem:[%s4335_s1 + $0xa8] sm:$0xff]  }
  0x91   : > { %v742_v1 = vpop.permute.xlu0 %741  ;;  %2743 = vmatprep.subr.bf16.mxu1 %v3006_v14  ;;  %v656_v20 = vpop.permute.xlu1 %655  ;;  %2875 = vmatprep.subr.bf16.mxu0 %v3021_v50  ;;  %v3012_v14 = vld [vmem:[%s4335_s1 + $0xa0] sm:$0xff]  }
  0x92   : > { %v927_v10 = vsel %vm824_vm2, %v3632_v19, %v742_v1  ;;  %v3697_v34 = vsel %vm824_vm2, %v3245_v6, %v656_v20  ;;  %v3026_v6 = vld [vmem:[%s4335_s1 + $0x100] sm:$0xff]  }
  0x93   : > { %1472 = vmatprep.mubr.bf16.mxu1 %v927_v10 }
  0x94   : > { %2744 = vmatpush3.bf16.msra.mxu1 %v3008_v57  ;;  %2876 = vmatpush3.bf16.msra.mxu0 %v3021_v50  ;;  %v3014_v57 = vld [vmem:[%s4335_s1 + $0x98] sm:$0xff]  }
  0x95   : > { %v718_v60 = vpop.permute.xlu0 %717  ;;  %2745 = vmatprep.subr.bf16.mxu1 %v3009_v8  ;;  %v632_v21 = vpop.permute.xlu1 %631  ;;  %2877 = vmatprep.subr.bf16.mxu0 %v3025_v3  ;;  %v3015_v8 = vld [vmem:[%s4335_s1 + $0xd0] sm:$0xff]  }
  0x96   : > { %v879_v40 = vsel %vm824_vm2, %v3389_v33, %v718_v60  ;;  %v829_v24 = vsel %vm824_vm2, %v3248_v7, %v632_v21  ;;  %v3013_v33 = vld [vmem:[%s4335_s1 + $0xd8] sm:$0xff]   ;;  %v3017_v60 = vld [vmem:[%s4335_s1 + $0xc8] sm:$0xff]  }
  0x97   : > { %1376 = vmatprep.mubr.bf16.mxu0 %v879_v40  ;;  %1473 = vmatmul.mubr.bf16.gmra.mxu1 %v3697_v34  ;;  %v3018_v40 = vld [vmem:[%s4335_s1 + $0x88] sm:$0xff]  }
  0x98   : > { %2746 = vmatpush3.bf16.msra.mxu1 %v3010_v13  ;;  %1377 = vmatmul.mubr.bf16.gmra.mxu0 %v829_v24  ;;  %v3019_v24 = vld [vmem:[%s4335_s1 + $0xc0] sm:$0xff]  }
  0x99   : > { %v744_v41 = vpop.permute.xlu0 %743  ;;  %2747 = vmatprep.subr.bf16.mxu1 %v3011_v0  ;;  %2878 = vmatpush3.bf16.msra.mxu0 %v3025_v3  ;;  %v658_v50 = vpop.permute.xlu1 %657  ;;  %v3016_v3 = vld [vmem:[%s4335_s1 + $0x90] sm:$0xff]  }
  0x9a   : > { %v931_v54 = vsel %vm824_vm2, %v3637_v22, %v744_v41  ;;  %2879 = vmatprep.subr.bf16.mxu0 %v3026_v6  ;;  %v3723_v7 = vsel %vm824_vm2, %v3284_v32, %v658_v50 }
  0x9b   : > { %1480 = vmatprep.mubr.bf16.mxu1 %v931_v54 }
  0x9c   : > { %2748 = vmatpush3.bf16.msra.mxu1 %v3012_v14 }
  0x9d   : > { %v720_v1 = vpop.permute.xlu0 %719  ;;  %2749 = vmatprep.subr.bf16.mxu1 %v3013_v33  ;;  %2880 = vmatpush3.bf16.msra.mxu0 %v3026_v6  ;;  %v634_v20 = vpop.permute.xlu1 %633  ;;  %v3022_v33 = vld [vmem:[%s4335_s1 + $0x80] sm:$0xff]  }
  0x9e   : > { %v883_v10 = vsel %vm824_vm2, %v3412_v48, %v720_v1  ;;  %v832_v32 = vsel %vm824_vm2, %v3293_v37, %v634_v20 }
  0x9f   : > { %1384 = vmatprep.mubr.bf16.mxu0 %v883_v10  ;;  %1481 = vmatmul.mubr.bf16.gmra.mxu1 %v3723_v7 }
  0xa0   : > { %2750 = vmatpush3.bf16.msra.mxu1 %v3014_v57  ;;  %1385 = vmatmul.mubr.bf16.gmra.mxu0 %v832_v32 }
  0xa1   : > { %v746_v13 = vpop.permute.xlu0 %745  ;;  %2751 = vmatprep.subr.bf16.mxu1 %v3015_v8  ;;  %v660_v0 = vpop.permute.xlu1 %659 }
  0xa2   : > { %v935_v21 = vsel %vm824_vm2, %v3648_v35, %v746_v13  ;;  %v3746_v37 = vsel %vm824_vm2, %v3312_v49, %v660_v0 }
  0xa3   : > { %1488 = vmatprep.mubr.bf16.mxu1 %v935_v21 }
  0xa4   : > { %2752 = vmatpush3.bf16.msra.mxu1 %v3016_v3 }
  0xa5   : > { %v722_v6 = vpop.permute.xlu0 %721  ;;  %2753 = vmatprep.subr.bf16.mxu1 %v3017_v60  ;;  %v636_v14 = vpop.permute.xlu1 %635 }
  0xa6   : > { %v887_v41 = vsel %vm824_vm2, %v3455_v23, %v722_v6  ;;  %v835_v49 = vsel %vm824_vm2, %v3329_v59, %v636_v14 }
  0xa7   : > { %1392 = vmatprep.mubr.bf16.mxu0 %v887_v41  ;;  %1489 = vmatmul.mubr.bf16.gmra.mxu1 %v3746_v37 }
  0xa8   : > { %2754 = vmatpush3.bf16.msra.mxu1 %v3018_v40  ;;  %1393 = vmatmul.mubr.bf16.gmra.mxu0 %v835_v49 }
  0xa9   : > { %1529 = vmatprep.mubr.bf16.mxu1 %v832_v32  ;;  %2755 = vmatprep.subr.bf16.mxu1 %v3019_v24  ;;  %v766_v50 = vpop.permute.xlu0 %765  ;;  %v724_v54 = vpop.permute.xlu1 %723 }
  0xaa   : > { %v891_v57 = vsel %vm824_vm2, %v3483_v46, %v724_v54  ;;  %v939_v1 = vsel %vm824_vm2, %v3318_v51, %v766_v50 }
  0xab   : > { %1400 = vmatprep.mubr.bf16.mxu0 %v891_v57 }
  0xac   : > { %2756 = vmatpush3.bf16.msra.mxu1 %v3022_v33 }
  0xad   : > { %v638_v8 = vpop.permute.xlu0 %637  ;;  %v768_v20 = vpop.permute.xlu1 %767 }
  0xae   : > { %v838_v59 = vsel %vm824_vm2, %v3352_v16, %v638_v8  ;;  %v943_v13 = vsel %vm824_vm2, %v3347_v4, %v768_v20 }
  0xaf   : > { %1530 = vmatmul.mubr.bf16.vlgmr.msra.gmra.mxu1 %v939_v1 }
  0xb0   : > { %1401 = vmatmul.mubr.bf16.gmra.mxu0 %v838_v59  ;;  %1537 = vmatprep.mubr.bf16.mxu1 %v835_v49 }
  0xb1   : > { %v726_v10 = vpop.permute.xlu0 %725  ;;  %v640_v32 = vpop.permute.xlu1 %639 }
  0xb2   : > { %v895_v3 = vsel %vm824_vm2, %v3523_v15, %v726_v10  ;;  %v841_v51 = vsel %vm824_vm2, %v3373_v26, %v640_v32 }
  0xb3   : > { %1408 = vmatprep.mubr.bf16.mxu0 %v895_v3 }
  0xb5   : > { %v770_v60 = vpop.permute.xlu0 %769  ;;  %v728_v0 = vpop.permute.xlu1 %727 }
  0xb6   : > { %v899_v16 = vsel %vm824_vm2, %v3541_v39, %v728_v0  ;;  %v947_v6 = vsel %vm824_vm2, %v3380_v30, %v770_v60 }
  0xb7   : > { %1538 = vmatmul.mubr.bf16.gmra.mxu1 %v943_v13 }
  0xb8   : > { %1409 = vmatmul.mubr.bf16.gmra.mxu0 %v841_v51  ;;  %1545 = vmatprep.mubr.bf16.mxu1 %v838_v59 }
  0xb9   : > { %v642_v21 = vpop.permute.xlu0 %641  ;;  %1416 = vmatprep.mubr.bf16.mxu0 %v899_v16  ;;  %v772_v40 = vpop.permute.xlu1 %771 }
  0xba   : > { %v844_v4 = vsel %vm824_vm2, %v3396_v42, %v642_v21  ;;  %v951_v33 = vsel %vm824_vm2, %v3409_v52, %v772_v40 }
  0xbd   : > { %v730_v24 = vpop.permute.xlu0 %729  ;;  %v644_v14 = vpop.permute.xlu1 %643 }
  0xbe   : > { %v903_v26 = vsel %vm824_vm2, %v3562_v5, %v730_v24  ;;  %v847_v30 = vsel %vm824_vm2, %v3417_v58, %v644_v14 }
  0xbf   : > { %1546 = vmatmul.mubr.bf16.gmra.mxu1 %v947_v6 }
  0xc0   : > { %1417 = vmatmul.mubr.bf16.gmra.mxu0 %v844_v4  ;;  %1553 = vmatprep.mubr.bf16.mxu1 %v841_v51 }
  0xc1   : > { %1424 = vmatprep.mubr.bf16.mxu0 %v903_v26  ;;  %v774_v41 = vpop.permute.xlu0 %773  ;;  %v732_v49 = vpop.permute.xlu1 %731 }
  0xc2   : > { %v907_v42 = vsel %vm824_vm2, %v3576_v36, %v732_v49  ;;  %v955_v1 = vsel %vm824_vm2, %v3442_v12, %v774_v41 }
  0xc5   : > { %v646_v50 = vpop.permute.xlu0 %645  ;;  %v776_v54 = vpop.permute.xlu1 %775 }
  0xc6   : > { %v850_v8 = vsel %vm824_vm2, %v3458_v27, %v646_v50  ;;  %v959_v10 = vsel %vm824_vm2, %v3475_v38, %v776_v54 }
  0xc7   : > { %1554 = vmatmul.mubr.bf16.gmra.mxu1 %v951_v33 }
  0xc8   : > { %1425 = vmatmul.mubr.bf16.gmra.mxu0 %v847_v30  ;;  %1561 = vmatprep.mubr.bf16.mxu1 %v844_v4 }
  0xc9   : > { %1432 = vmatprep.mubr.bf16.mxu0 %v907_v42  ;;  %v734_v57 = vpop.permute.xlu0 %733  ;;  %v648_v58 = vpop.permute.xlu1 %647 }
  0xca   : > { %v911_v52 = vsel %vm824_vm2, %v3594_v2, %v734_v57  ;;  %v853_v32 = vsel %vm824_vm2, %v3492_v55, %v648_v58 }
  0xcd   : > { %v778_v59 = vpop.permute.xlu0 %777  ;;  %v736_v20 = vpop.permute.xlu1 %735 }
  0xce   : > { %v915_v12 = vsel %vm824_vm2, %v3602_v28, %v736_v20  ;;  %v963_v13 = vsel %vm824_vm2, %v3502_v62, %v778_v59 }
  0xcf   : > { %1562 = vmatmul.mubr.bf16.gmra.mxu1 %v955_v1 }
  0xd0   : > { %1433 = vmatmul.mubr.bf16.gmra.mxu0 %v850_v8  ;;  %1569 = vmatprep.mubr.bf16.mxu1 %v847_v30 }
  0xd1   : > { %1440 = vmatprep.mubr.bf16.mxu0 %v911_v52  ;;  %v650_v27 = vpop.permute.xlu0 %649  ;;  %v780_v51 = vpop.permute.xlu1 %779 }
  0xd2   : > { %v856_v60 = vsel %vm824_vm2, %v3529_v29, %v650_v27  ;;  %v967_v0 = vsel %vm824_vm2, %v3537_v18, %v780_v51 }
  0xd5   : > { %v738_v3 = vpop.permute.xlu0 %737  ;;  %v652_v55 = vpop.permute.xlu1 %651 }
  0xd6   : > { %v919_v38 = vsel %vm824_vm2, %v3612_v61, %v738_v3  ;;  %v859_v16 = vsel %vm824_vm2, %v3544_v45, %v652_v55 }
  0xd7   : > { %1570 = vmatmul.mubr.bf16.gmra.mxu1 %v959_v10 }
  0xd8   : > { %1441 = vmatmul.mubr.bf16.gmra.mxu0 %v853_v32  ;;  %1577 = vmatprep.mubr.bf16.mxu1 %v850_v8 }
  0xd9   : > { %1448 = vmatprep.mubr.bf16.mxu0 %v915_v12  ;;  %v782_v62 = vpop.permute.xlu0 %781  ;;  %v784_v21 = vpop.permute.xlu1 %783 }
  0xda   : > { %v971_v29 = vsel %vm824_vm2, %v3555_v63, %v782_v62  ;;  %v975_v18 = vsel %vm824_vm2, %v3573_v47, %v784_v21 }
  0xdf   : > { %1578 = vmatmul.mubr.bf16.gmra.mxu1 %v963_v13 }
  0xe0   : > { %1449 = vmatmul.mubr.bf16.gmra.mxu0 %v856_v60  ;;  %1585 = vmatprep.mubr.bf16.mxu1 %v853_v32 }
  0xe1   : > { %1456 = vmatprep.mubr.bf16.mxu0 %v919_v38 }
  0xe7   : > { %1586 = vmatmul.mubr.bf16.gmra.mxu1 %v967_v0 }
  0xe8   : > { %1457 = vmatmul.mubr.bf16.gmra.mxu0 %v859_v16  ;;  %1593 = vmatprep.mubr.bf16.mxu1 %v856_v60 }
  0xe9   : > { %2881 = vmatprep.mubr.msk.bf16.mxu0 %vm824_vm2, %v3412_v48  ;;  %v786_v48 = vpop.permute.xlu0 %785 }
  0xef   : > { %1594 = vmatmul.mubr.bf16.gmra.mxu1 %v971_v29 }
  0xf0   : > { %1601 = vmatprep.mubr.bf16.mxu1 %v859_v16  ;;  %2882 = vmatmul.mubr.msk.bf16.vlgmr.msra.gmra.mxu0 %vm824_vm2, %v3455_v23  ;;  %v979_v23 = vsel %vm824_vm2, %v3585_v53, %v786_v48 }
  0xf1   : > { %2885 = vmatprep.mubr.msk.bf16.mxu0 %vm824_vm2, %v3483_v46  ;;  %v788_v46 = vpop.permute.xlu1 %787 }
  0xf7   : > { %1602 = vmatmul.mubr.bf16.gmra.mxu1 %v975_v18 }
  0xf8   : > { %1609 = vmatprep.mubr.bf16.mxu1 %v3675_v44  ;;  %2886 = vmatmul.mubr.msk.bf16.gmra.mxu0 %vm824_vm2, %v3523_v15  ;;  %v983_v15 = vsel %vm824_vm2, %v3281_v31, %v788_v46  ;;  %v792_v31 = vpop.permute.xlu1 %791 }
  0xf9   : > { %2889 = vmatprep.mubr.msk.bf16.mxu0 %vm824_vm2, %v3541_v39  ;;  %v790_v39 = vpop.permute.xlu0 %789 }
  0xfa   : > { %v987_v45 = vsel %vm824_vm2, %v3303_v43, %v790_v39 }
  0xfc   : > { %v794_v43 = vpop.permute.xlu1 %793 }
  0xfd   : > { %v818_v63 = vpop.permute.xlu0 %817 }
  0xff   : > { %1610 = vmatmul.mubr.bf16.gmra.mxu1 %v979_v23 }
 0x100   : > { %1617 = vmatprep.mubr.bf16.mxu1 %v3697_v34  ;;  %2890 = vmatmul.mubr.msk.bf16.gmra.mxu0 %vm824_vm2, %v3562_v5  ;;  %v4344_v5 = vld [vmem:[#allocation2_spill] sm:$0xff] }
 0x101   : > { %2893 = vmatprep.mubr.msk.bf16.mxu0 %vm824_vm2, %v3576_v36  ;;  %v991_v47 = vsel %vm824_vm2, %v4344_v5, %v792_v31  ;;  %v1002_v36 = vsel %vm824_vm2, %v3357_v17, %v818_v63  ;;  %v820_v53 = vpop.permute.xlu0 %819  ;;  %v796_v17 = vpop.permute.xlu1 %795  ;;  %v3901_v5 = vld [vmem:[%s4336_s2] ss:$0 sm:$0xff] }
 0x102   : > { %v999_v44 = vsel %vm824_vm2, %v3644_v25, %v796_v17 }
 0x107   : > { %1618 = vmatmul.mubr.bf16.gmra.mxu1 %v983_v15 }
 0x108   : > { %1625 = vmatprep.mubr.bf16.mxu1 %v3723_v7  ;;  %2894 = vmatmul.mubr.msk.bf16.gmra.mxu0 %vm824_vm2, %v3594_v2  ;;  %v4345_v2 = vld [vmem:[#allocation3_spill] sm:$0xff] }
 0x109   : > { %2897 = vmatprep.mubr.msk.bf16.mxu0 %vm824_vm2, %v3602_v28  ;;  %v995_v28 = vsel %vm824_vm2, %v4345_v2, %v794_v43 }
 0x10f   : > { %1626 = vmatmul.mubr.bf16.gmra.mxu1 %v987_v45 }
 0x110   : > { %1633 = vmatprep.mubr.bf16.mxu1 %v3746_v37  ;;  %2898 = vmatmul.mubr.msk.bf16.gmra.mxu0 %vm824_vm2, %v3612_v61  ;;  %v1005_v61 = vsel %vm824_vm2, %v3599_v11, %v820_v53 }
 0x111   : > { %2901 = vmatprep.mubr.msk.bf16.mxu0 %vm824_vm2, %v3621_v9  ;;  %v821_v9 = vrot.slane %v3599_v11, 1 }
 0x117   : > { %1634 = vmatmul.mubr.bf16.gmra.mxu1 %v991_v47 }
 0x118   : > { %2902 = vmatmul.mubr.msk.bf16.gmra.mxu0 %vm824_vm2, %v3632_v19  ;;  %1641 = vmatprep.mubr.bf16.mxu1 %v1002_v36  ;;  %v4346_v19 = vld [vmem:[#allocation4_spill] sm:$0xff] }
 0x119   : > { %2905 = vmatprep.mubr.msk.bf16.mxu0 %vm824_vm2, %v3637_v22  ;;  %v822_v22 = vrot.slane %v4346_v19, 1 }
 0x11b   : > { %v823_v34 = vsel %vm661_vm1, %v821_v9, %v822_v22 }
 0x11f   : > { %1642 = vmatmul.mubr.bf16.gmra.mxu1 %v995_v28 }
 0x120   : > { %2906 = vmatmul.mubr.msk.bf16.gmra.mxu0 %vm824_vm2, %v3648_v35  ;;  %1649 = vmatprep.mubr.bf16.mxu1 %v1005_v61 }
 0x121   : > { %2909 = vmatprep.mubr.msk.bf16.mxu0 %vm824_vm2, %v3656_v56 }
 0x127   : > { %1650 = vmatmul.mubr.bf16.gmra.mxu1 %v999_v44 }
 0x128   : > { %2910 = vmatmul.mubr.msk.bf16.gmra.mxu0 %vm824_vm2, %v823_v34 }
 0x14f   : > { %v2717_v7 = vpop.f32.mrf.mxu1  ;;  %v2645_v37 = vpop.f32.mrf.mxu0 }
 0x151   : > { %v2718_v35 = vpop.f32.mrf.mxu1  ;;  %v2646_v40 = vpop.f32.mrf.mxu0 }
 0x152   : > { %v3868_v6 = vadd.f32 %v2718_v35, %v2717_v7  ;;  %v2647_v4 = vadd.f32 %v2646_v40, %v2645_v37 }
 0x153   : > { %v2720_v56 = vpop.f32.mrf.mxu1  ;;  %v2648_v24 = vpop.f32.mrf.mxu0 }
 0x154   : > { %v1371_v36 = vadd.f32 %v2647_v4, %v3901_v5 }
 0x155   : > { %v2721_v11 = vpop.f32.mrf.mxu1  ;;  %v2649_v26 = vpop.f32.mrf.mxu0 }
 0x156   : > { %v3870_v14 = vadd.f32 %v2721_v11, %v2720_v56  ;;  %v3872_v41 = vadd.f32 %v2649_v26, %v2648_v24 }
 0x157   : > { %v2723_v25 = vpop.f32.mrf.mxu1 }
 0x158   : > { %v2651_v49 = vpop.f32.mrf.mxu0 }
 0x159   : > { %v2724_v33 = vpop.f32.mrf.mxu1 }
 0x15a   : > { %v3874_v30 = vadd.f32 %v2724_v33, %v2723_v25  ;;  %v2652_v42 = vpop.f32.mrf.mxu0 }
 0x15b   : > { %v3876_v50 = vadd.f32 %v2652_v42, %v2651_v49  ;;  %v2726_v54 = vpop.f32.mrf.mxu1 }
 0x15c   : > { %v2654_v57 = vpop.f32.mrf.mxu0 }
 0x15d   : > { %v2727_v1 = vpop.f32.mrf.mxu1 }
 0x15e   : > { %v3878_v8 = vadd.f32 %v2727_v1, %v2726_v54  ;;  %v2655_v52 = vpop.f32.mrf.mxu0 }
 0x15f   : > { %v3880_v58 = vadd.f32 %v2655_v52, %v2654_v57  ;;  %v2729_v59 = vpop.f32.mrf.mxu1 }
 0x160   : > { %v2657_v20 = vpop.f32.mrf.mxu0 }
 0x161   : > { %v2730_v10 = vpop.f32.mrf.mxu1 }
 0x162   : > { %v3882_v32 = vadd.f32 %v2730_v10, %v2729_v59  ;;  %v2658_v12 = vpop.f32.mrf.mxu0 }
 0x163   : > { %v3884_v27 = vadd.f32 %v2658_v12, %v2657_v20  ;;  %v2732_v3 = vpop.f32.mrf.mxu1 }
 0x164   : > { %4347 = vst [vmem:[#allocation2_spill] sm:$0xff] %v3882_v32  ;;  %v2660_v13 = vpop.f32.mrf.mxu0 }
 0x165   : > { %v2733_v51 = vpop.f32.mrf.mxu1 }
 0x166   : > { %v3886_v60 = vadd.f32 %v2733_v51, %v2732_v3  ;;  %v2661_v38 = vpop.f32.mrf.mxu0 }
 0x167   : > { %v3888_v55 = vadd.f32 %v2661_v38, %v2660_v13  ;;  %v2735_v0 = vpop.f32.mrf.mxu1 }
 0x168   : > { %4348 = vst [vmem:[#allocation3_spill] sm:$0xff] %v3886_v60  ;;  %v2663_v16 = vpop.f32.mrf.mxu0 }
 0x169   : > { %v2736_v62 = vpop.f32.mrf.mxu1 }
 0x16a   : > { %v3890_v29 = vadd.f32 %v2736_v62, %v2735_v0  ;;  %v2664_v21 = vpop.f32.mrf.mxu0 }
 0x16b   : > { %v3892_v18 = vadd.f32 %v2664_v21, %v2663_v16  ;;  %v2738_v48 = vpop.f32.mrf.mxu1 }
 0x16c   : > { %4349 = vst [vmem:[#allocation4_spill] sm:$0xff] %v3890_v29  ;;  %v2666_v23 = vpop.f32.mrf.mxu0 }
 0x16d   : > { %v2739_v46 = vpop.f32.mrf.mxu1 }
 0x16e   : > { %v3894_v15 = vadd.f32 %v2739_v46, %v2738_v48  ;;  %v2667_v39 = vpop.f32.mrf.mxu0 }
 0x16f   : > { %v3896_v45 = vadd.f32 %v2667_v39, %v2666_v23  ;;  %v2757_v31 = vpop.f32.mrf.mxu1 }
 0x170   : > { %4350 = vst [vmem:[#allocation5_spill] sm:$0xff] %v3894_v15  ;;  %v2669_v63 = vpop.f32.mrf.mxu0 }
 0x171   : > { %v2758_v47 = vpop.f32.mrf.mxu1 }
 0x172   : > { %v2759_v43 = vadd.f32 %v2758_v47, %v2757_v31  ;;  %v2670_v53 = vpop.f32.mrf.mxu0 }
 0x173   : > { %v3904_v2 = vadd.f32 %v2670_v53, %v2669_v63  ;;  %v3906_v28 = vpop.f32.mrf.mxu1 }
 0x174   : > { %v2672_v61 = vpop.f32.mrf.mxu0  ;;  %v3908_v17 = vadd.f32 %v2759_v43, %v1371_v36 }
 0x175   : > { %v3910_v9 = vpop.f32.mrf.mxu1 }
 0x176   : > { %v2673_v19 = vpop.f32.mrf.mxu0 }
 0x177   : > { %v3912_v22 = vadd.f32 %v2673_v19, %v2672_v61  ;;  %v2763_v44 = vpop.f32.mrf.mxu1 }
 0x178   : > { %v2675_v34 = vpop.f32.mrf.mxu0 }
 0x179   : > { %v2764_v7 = vpop.f32.mrf.mxu1 }
 0x17a   : > { %v2676_v37 = vpop.f32.mrf.mxu0 }
 0x17b   : > { %v3914_v35 = vadd.f32 %v2676_v37, %v2675_v34  ;;  %v2766_v40 = vpop.f32.mrf.mxu1 }
 0x17c   : > { %v2678_v4 = vpop.f32.mrf.mxu0 }
 0x17d   : > { %v2767_v56 = vpop.f32.mrf.mxu1 }
 0x17e   : > { %v2679_v24 = vpop.f32.mrf.mxu0 }
 0x17f   : > { %v3916_v11 = vadd.f32 %v2679_v24, %v2678_v4  ;;  %v3918_v26 = vpop.f32.mrf.mxu1 }
 0x180   : > { %v2681_v25 = vpop.f32.mrf.mxu0 }
 0x181   : > { %v3920_v49 = vpop.f32.mrf.mxu1 }
 0x182   : > { %v2682_v33 = vpop.f32.mrf.mxu0 }
 0x183   : > { %v3922_v42 = vadd.f32 %v2682_v33, %v2681_v25  ;;  %v3924_v54 = vpop.f32.mrf.mxu1 }
 0x184   : > { %v2684_v57 = vpop.f32.mrf.mxu0 }
 0x185   : > { %v3926_v1 = vpop.f32.mrf.mxu1 }
 0x186   : > { %v2685_v52 = vpop.f32.mrf.mxu0 }
 0x187   : > { %v3928_v59 = vadd.f32 %v2685_v52, %v2684_v57  ;;  %v2775_v20 = vpop.f32.mrf.mxu1 }
 0x188   : > { %v3930_v10 = vpop.f32.mrf.mxu0 }
 0x189   : > { %v2776_v12 = vpop.f32.mrf.mxu1 }
 0x18a   : > { %v3932_v3 = vpop.f32.mrf.mxu0 }
 0x18b   : > { %v3934_v13 = vpop.f32.mrf.mxu1 }
 0x18c   : > { %v3936_v51 = vpop.f32.mrf.mxu0 }
 0x18d   : > { %v3938_v38 = vpop.f32.mrf.mxu1 }
 0x18e   : > { %v3940_v0 = vpop.f32.mrf.mxu0 }
 0x18f   : > { %v3942_v16 = vpop.f32.mrf.mxu1 }
 0x190   : > { %v3944_v62 = vpop.f32.mrf.mxu0 }
 0x191   : > { %v3946_v21 = vpop.f32.mrf.mxu1 }
 0x192   : > { %v3948_v48 = vpop.f32.mrf.mxu0 }
 0x193   : > { %v3950_v23 = vpop.f32.mrf.mxu1 }
 0x194   : > { %v3952_v46 = vpop.f32.mrf.mxu0 }
 0x195   : > { %v3954_v39 = vpop.f32.mrf.mxu1 }
 0x196   : > { %v3956_v31 = vpop.f32.mrf.mxu0 }
 0x197   : > { %v3958_v63 = vpop.f32.mrf.mxu1 }
 0x198   : > { %v3960_v47 = vpop.f32.mrf.mxu0 }
 0x199   : > { %v3962_v36 = vpop.f32.mrf.mxu1 }
 0x19a   : > { %v3964_v43 = vpop.f32.mrf.mxu0 }
 0x19b   : > { %v3966_v53 = vpop.f32.mrf.mxu1 }
 0x19c   : > { %v3968_v61 = vpop.f32.mrf.mxu0 }
 0x19d   : > { %v3970_v19 = vpop.f32.mrf.mxu1 }
 0x19e   : > { %v3972_v34 = vpop.f32.mrf.mxu0 }
 0x19f   : > { %v3974_v37 = vpop.f32.mrf.mxu1 }
 0x1a0   : > { %4351 = vst [vmem:[#allocation6_spill] sm:$0xff] %v3974_v37  ;;  %v3976_v4 = vpop.f32.mrf.mxu0 }
 0x1a1   : > { %4352 = vst [vmem:[#allocation7_spill] sm:$0xff] %v3976_v4  ;;  %v3978_v24 = vpop.f32.mrf.mxu1  ;;  %v2765_v4 = vadd.f32 %v2764_v7, %v2763_v44  ;;  %v4014_v44 = vadd.f32 %v3868_v6, %v3901_v5  ;;  %v1382_v7 = vadd.f32 %v3880_v58, %v3901_v5  ;;  %v4034_v6 = vadd.f32 %v3878_v8, %v3901_v5 }
 0x1a2   : > { %4353 = vst [vmem:[#allocation8_spill] sm:$0xff] %v3978_v24  ;;  %v3980_v25 = vpop.f32.mrf.mxu0  ;;  %v1395_v8 = vadd.f32 %v3892_v18, %v3901_v5  ;;  %v2774_v18 = vadd.f32 %v3926_v1, %v3924_v54  ;;  %v1414_v54 = vadd.f32 %v3916_v11, %v3901_v5  ;;  %v2689_v1 = vadd.f32 %v3932_v3, %v3930_v10 }
 0x1a3   : > { %4354 = vst [vmem:[#allocation9_spill] sm:$0xff] %v3980_v25  ;;  %v3982_v33 = vpop.f32.mrf.mxu1  ;;  %v2789_v10 = vadd.f32 %v3962_v36, %v3958_v63  ;;  %v2786_v36 = vadd.f32 %v3954_v39, %v3950_v23 }
 0x1a4   : > { %4355 = vst [vmem:[#allocation10_spill] sm:$0xff] %v3982_v33  ;;  %v3984_v57 = vpop.f32.mrf.mxu0 }
 0x1a5   : > { %4356 = vst [vmem:[#allocation11_spill] sm:$0xff] %v3984_v57  ;;  %v3986_v52 = vpop.f32.mrf.mxu1  ;;  %v1379_v57 = vadd.f32 %v3876_v50, %v3901_v5 }
 0x1a6   : > { %4357 = vst [vmem:[#allocation12_spill] sm:$0xff] %v3986_v52  ;;  %v3988_v15 = vpop.f32.mrf.mxu0 }
 0x1a7   : > { %4358 = vst [vmem:[#allocation13_spill] sm:$0xff] %v3988_v15  ;;  %v3990_v60 = vpop.f32.mrf.mxu1  ;;  %v2768_v15 = vadd.f32 %v2767_v56, %v2766_v40  ;;  %v1374_v40 = vadd.f32 %v3872_v41, %v3901_v5  ;;  %v4026_v56 = vadd.f32 %v3870_v14, %v3901_v5  ;;  %v1387_v14 = vadd.f32 %v3884_v27, %v3901_v5 }
 0x1a8   : > { %4359 = vst [vmem:[#allocation14_spill] sm:$0xff] %v3990_v60  ;;  %v3992_v29 = vpop.f32.mrf.mxu0  ;;  %v1398_v27 = vadd.f32 %v3896_v45, %v3901_v5  ;;  %v1406_v45 = vadd.f32 %v3912_v22, %v3901_v5  ;;  %v1419_v22 = vadd.f32 %v3922_v42, %v3901_v5  ;;  %v1427_v42 = vadd.f32 %v2689_v1, %v3901_v5 }
 0x1a9   : > { %4360 = vst [vmem:[#allocation15_spill] sm:$0xff] %v3992_v29  ;;  %v3994_v32 = vpop.f32.mrf.mxu1  ;;  %v1540_v29 = vadd.f32 %v2765_v4, %v1379_v57  ;;  %4364 = vst [vmem:[#allocation19_spill] sm:$0xff] %v4026_v56  ;;  %v1543_v4 = vadd.f32 %v2768_v15, %v1382_v7 }
 0x1aa   : > { %4361 = vst [vmem:[#allocation16_spill] sm:$0xff] %v3994_v32  ;;  %v3996_v37 = vpop.f32.mrf.mxu0  ;;  %v2762_v32 = vadd.f32 %v3910_v9, %v3906_v28  ;;  %v4030_v28 = vadd.f32 %v3874_v30, %v3901_v5  ;;  %v1390_v30 = vadd.f32 %v3888_v55, %v3901_v5  ;;  %v1403_v55 = vadd.f32 %v3904_v2, %v3901_v5 }
 0x1ab   : > { %4362 = vst [vmem:[#allocation17_spill] sm:$0xff] %v3996_v37  ;;  %v3998_v24 = vpop.f32.mrf.mxu1  ;;  %v1411_v2 = vadd.f32 %v3914_v35, %v3901_v5  ;;  %v2692_v35 = vadd.f32 %v3940_v0, %v3936_v51  ;;  %v2783_v51 = vadd.f32 %v3946_v21, %v3942_v16  ;;  %v2695_v0 = vadd.f32 %v3948_v48, %v3944_v62 }
 0x1ac   : > { %v4000_v25 = vpop.f32.mrf.mxu0  ;;  %v1535_v56 = vadd.f32 %v2762_v32, %v1374_v40  ;;  %v2780_v32 = vadd.f32 %v3938_v38, %v3934_v13  ;;  %v2698_v16 = vadd.f32 %v3956_v31, %v3952_v46  ;;  %v2701_v62 = vadd.f32 %v3964_v43, %v3960_v47  ;;  %v4365_v31 = vld [vmem:[#allocation6_spill] sm:$0xff]  ;;  %v4366_v47 = vld [vmem:[#allocation8_spill] sm:$0xff] }
 0x1ad   : > { %4363 = vst [vmem:[#allocation18_spill] sm:$0xff] %v4000_v25  ;;  %v4004_v33 = vpop.f32.mrf.mxu1  ;;  %v2792_v21 = vadd.f32 %v3970_v19, %v3966_v53  ;;  %v2704_v46 = vadd.f32 %v3972_v34, %v3968_v61  ;;  %v2795_v43 = vadd.f32 %v4366_v47, %v4365_v31  ;;  %v1564_v53 = vadd.f32 %v2783_v51, %v1403_v55 }
 0x1ae   : > { %v4006_v52 = vpop.f32.mrf.mxu0  ;;  %v1559_v11 = vadd.f32 %v2780_v32, %v1398_v27  ;;  %v1572_v32 = vadd.f32 %v2789_v10, %v1411_v2 }
 0x1af   : > { %v4008_v60 = vpop.f32.mrf.mxu1  ;;  %v4367_v61 = vld [vmem:[#allocation14_spill] sm:$0xff]  ;;  %v1575_v55 = vadd.f32 %v2792_v21, %v1414_v54  ;;  %v4148_v51 = vadd.f32 %v2704_v46, %v3901_v5  ;;  %v1580_v54 = vadd.f32 %v2795_v43, %v1419_v22 }
 0x1b0   : > { %v2883_v37 = vpop.f32.mrf.mxu0 }
 0x1b1   : > { %v4018_v50 = vadd.f32 %v2883_v37, %v1540_v29  ;;  %v4020_v25 = vpop.f32.mrf.mxu1  ;;  %v2777_v29 = vadd.f32 %v2776_v12, %v2775_v20  ;;  %v2771_v20 = vadd.f32 %v3920_v49, %v3918_v26  ;;  %v4368_v34 = vld [vmem:[#allocation16_spill] sm:$0xff] }
 0x1b2   : > { %v1692_v58 = vpop.f32.mrf.mxu0 }
 0x1b3   : > { %v2437_v9 = vmul.f32 -1.442695, %v4018_v50  ;;  %v4038_v37 = vadd.f32 %v1692_v58, %v3908_v17  ;;  %v4040_v41 = vpop.f32.mrf.mxu1  ;;  %v1556_v58 = vadd.f32 %v2777_v29, %v1395_v8  ;;  %v1548_v29 = vadd.f32 %v2771_v20, %v1387_v14 }
 0x1b4   : > { %v2884_v57 = vpop.f32.mrf.mxu0  ;;  %v1551_v8 = vadd.f32 %v2774_v18, %v1390_v30  ;;  %v4094_v14 = vadd.f32 %v3928_v59, %v3901_v5  ;;  %v4109_v59 = vadd.f32 %v2692_v35, %v3901_v5  ;;  %v2801_v35 = vadd.f32 %v4368_v34, %v4367_v61 }
 0x1b5   : > { %3027 = vpow2.f32 %v2437_v9  ;;  %v2435_v17 = vmul.f32 -1.442695, %v4038_v37  ;;  %v4051_v12 = vadd.f32 %v2884_v57, %v1543_v4  ;;  %v4053_v15 = vpop.f32.mrf.mxu1 }
 0x1b6   : > { %v1695_v26 = vpop.f32.mrf.mxu0  ;;  %v1588_v61 = vadd.f32 %v2801_v35, %v1427_v42 }
 0x1b7   : > { %3029 = vpow2.f32 %v2435_v17  ;;  %v2438_v49 = vmul.f32 -1.442695, %v4051_v12  ;;  %v4064_v7 = vadd.f32 %v1695_v26, %v1535_v56  ;;  %v4066_v40 = vpop.f32.mrf.mxu1  ;;  %v4123_v26 = vadd.f32 %v2695_v0, %v3901_v5  ;;  %v4369_v0 = vld [vmem:[#allocation7_spill] sm:$0xff] }
 0x1b8   : > { %v2887_v13 = vpop.f32.mrf.mxu0 }
 0x1b9   : > { %3031 = vpow2.f32 %v2438_v49  ;;  %v2436_v38 = vmul.f32 -1.442695, %v4064_v7  ;;  %v4077_v56 = vadd.f32 %v2887_v13, %v1556_v58  ;;  %v4079_v9 = vpop.f32.mrf.mxu1  ;;  %v1567_v13 = vadd.f32 %v2786_v36, %v1406_v45 }
 0x1ba   : > { %v1708_v4 = vpop.f32.mrf.mxu0 }
 0x1bb   : > { %3033 = vpow2.f32 %v2436_v38  ;;  %v2441_v3 = vmul.f32 -1.442695, %v4077_v56  ;;  %v4088_v57 = vadd.f32 %v1708_v4, %v1548_v29  ;;  %v4090_v17 = vpop.f32.mrf.mxu1  ;;  %v4135_v38 = vadd.f32 %v2698_v16, %v3901_v5  ;;  %v4372_v16 = vld [vmem:[#allocation12_spill] sm:$0xff] }
 0x1bc   : > { %v2888_v63 = vpop.f32.mrf.mxu0  ;;  %v4138_v29 = vadd.f32 %v2701_v62, %v3901_v5 }
 0x1bd   : > { %3035 = vpow2.f32 %v2441_v3  ;;  %v2439_v30 = vmul.f32 -1.442695, %v4088_v57  ;;  %v4104_v20 = vadd.f32 %v2888_v63, %v1559_v11  ;;  %v4106_v27 = vpop.f32.mrf.mxu1  ;;  %v4370_v63 = vld [vmem:[#allocation9_spill] sm:$0xff] }
 0x1be   : > { %v1711_v48 = vpop.f32.mrf.mxu0  ;;  %v2707_v36 = vadd.f32 %v4370_v63, %v4369_v0 }
 0x1bf   : > { %3037 = vpow2.f32 %v2439_v30  ;;  %v2442_v23 = vmul.f32 -1.442695, %v4104_v20  ;;  %v4118_v39 = vadd.f32 %v1711_v48, %v1551_v8  ;;  %v4120_v18 = vpop.f32.mrf.mxu1  ;;  %v4371_v30 = vld [vmem:[#allocation10_spill] sm:$0xff] }
 0x1c0   : > { %v2891_v49 = vpop.f32.mrf.mxu0  ;;  %v2798_v62 = vadd.f32 %v4372_v16, %v4371_v30 }
 0x1c1   : > { %3039 = vpow2.f32 %v2442_v23  ;;  %v2440_v19 = vmul.f32 -1.442695, %v4118_v39  ;;  %v4130_v58 = vadd.f32 %v2891_v49, %v1572_v32  ;;  %v4132_v1 = vpop.f32.mrf.mxu1  ;;  %v4373_v49 = vld [vmem:[#allocation11_spill] sm:$0xff] }
 0x1c2   : > { %v3028_v2 = vpop.eup %3027  ;;  %v1724_v4 = vpop.f32.mrf.mxu0 }
 0x1c3   : > { %v1917_v11 = vadd.f32 1.0, %v3028_v2  ;;  %3041 = vpow2.f32 %v2440_v19  ;;  %v2445_v8 = vmul.f32 -1.442695, %v4130_v58  ;;  %v4143_v10 = vadd.f32 %v1724_v4, %v1564_v53  ;;  %v4145_v3 = vpop.f32.mrf.mxu1  ;;  %v4374_v53 = vld [vmem:[#allocation13_spill] sm:$0xff] }
 0x1c4   : > { %v3030_v45 = vpop.eup %3029  ;;  %v2892_v48 = vpop.f32.mrf.mxu0  ;;  %v2710_v46 = vadd.f32 %v4374_v53, %v4373_v49  ;;  %v2804_v19 = vadd.f32 %v4004_v33, %v3998_v24  ;;  %v1583_v24 = vadd.f32 %v2798_v62, %v4094_v14  ;;  %v4377_v49 = vld [vmem:[#allocation18_spill] sm:$0xff] }
 0x1c5   : > { %3043 = vrcp.f32 %v1917_v11  ;;  %v1915_v21 = vadd.f32 1.0, %v3030_v45  ;;  %v2443_v23 = vmul.f32 -1.442695, %v4143_v10  ;;  %v4155_v32 = vadd.f32 %v2892_v48, %v1575_v55  ;;  %v2821_v31 = vpop.f32.mrf.mxu1 }
 0x1c6   : > { %v3032_v47 = vpop.eup %3031  ;;  %3045 = vpow2.f32 %v2445_v8  ;;  %v1727_v2 = vpop.f32.mrf.mxu0  ;;  %v4165_v11 = vadd.f32 %v2707_v36, %v3901_v5  ;;  %v2807_v45 = vadd.f32 %v4020_v25, %v4008_v60  ;;  %v1454_v63 = vadd.f32 %v2710_v46, %v3901_v5 }
 0x1c7   : > { %3047 = vrcp.f32 %v1915_v21  ;;  %v1918_v34 = vadd.f32 1.0, %v3032_v47  ;;  %v2446_v22 = vmul.f32 -1.442695, %v4155_v32  ;;  %v4162_v43 = vadd.f32 %v1727_v2, %v1567_v13  ;;  %v2823_v4 = vpop.f32.mrf.mxu1  ;;  %v4375_v21 = vld [vmem:[#allocation15_spill] sm:$0xff] }
 0x1c8   : > { %v3034_v55 = vpop.eup %3033  ;;  %3049 = vpow2.f32 %v2443_v23  ;;  %v2895_v0 = vpop.f32.mrf.mxu0  ;;  %v2813_v36 = vadd.f32 %v4079_v9, %v4066_v40  ;;  %v1591_v60 = vadd.f32 %v2804_v19, %v4109_v59  ;;  %v4376_v23 = vld [vmem:[#allocation17_spill] sm:$0xff]  ;;  %v2716_v53 = vadd.f32 %v4006_v52, %v4377_v49 }
 0x1c9   : > { %3051 = vrcp.f32 %v1918_v34  ;;  %v1916_v33 = vadd.f32 1.0, %v3034_v55  ;;  %v2444_v42 = vmul.f32 -1.442695, %v4162_v43  ;;  %v4171_v35 = vadd.f32 %v2895_v0, %v1588_v61  ;;  %v2824_v13 = vpop.f32.mrf.mxu1 }
 0x1ca   : > { %v3036_v8 = vpop.eup %3035  ;;  %3053 = vpow2.f32 %v2446_v22  ;;  %v1740_v30 = vpop.f32.mrf.mxu0  ;;  %v2713_v47 = vadd.f32 %v4376_v23, %v4375_v21  ;;  %v1596_v9 = vadd.f32 %v2807_v45, %v4123_v26  ;;  %v2810_v61 = vadd.f32 %v4053_v15, %v4040_v41 }
 0x1cb   : > { %3055 = vrcp.f32 %v1916_v33  ;;  %v1921_v25 = vadd.f32 1.0, %v3036_v8  ;;  %v2449_v14 = vmul.f32 -1.442695, %v4171_v35  ;;  %v4178_v16 = vadd.f32 %v1740_v30, %v1580_v54  ;;  %v4180_v62 = vpop.f32.mrf.mxu1 }
 0x1cc   : > { %v3038_v48 = vpop.eup %3037  ;;  %3057 = vpow2.f32 %v2444_v42  ;;  %v2896_v40 = vpop.f32.mrf.mxu0  ;;  %v2816_v34 = vadd.f32 %v4106_v27, %v4090_v17  ;;  %v1604_v22 = vadd.f32 %v2813_v36, %v4138_v29  ;;  %v2819_v42 = vadd.f32 %v4132_v1, %v4120_v18 }
 0x1cd   : > { %3059 = vrcp.f32 %v1921_v25  ;;  %v1919_v59 = vadd.f32 1.0, %v3038_v48  ;;  %v2447_v46 = vmul.f32 -1.442695, %v4178_v16  ;;  %v4188_v19 = vadd.f32 %v2896_v40, %v1591_v60  ;;  %v2827_v54 = vpop.f32.mrf.mxu1 }
 0x1ce   : > { %v3040_v2 = vpop.eup %3039  ;;  %3061 = vpow2.f32 %v2449_v14  ;;  %v1743_v52 = vpop.f32.mrf.mxu0  ;;  %v2822_v41 = vadd.f32 %v2821_v31, %v4145_v3  ;;  %v2825_v15 = vadd.f32 %v2824_v13, %v2823_v4  ;;  %v1462_v60 = vadd.f32 %v2716_v53, %v3901_v5 }
 0x1cf   : > { %3063 = vrcp.f32 %v1919_v59  ;;  %v1922_v26 = vadd.f32 1.0, %v3040_v2  ;;  %v2450_v55 = vmul.f32 -1.442695, %v4188_v19  ;;  %v4196_v45 = vadd.f32 %v1743_v52, %v1583_v24  ;;  %v2829_v0 = vpop.f32.mrf.mxu1 }
 0x1d0   : > { %v3042_v33 = vpop.eup %3041  ;;  %3065 = vpow2.f32 %v2447_v46  ;;  %v2899_v17 = vpop.f32.mrf.mxu0  ;;  %v1459_v24 = vadd.f32 %v2713_v47, %v3901_v5  ;;  %v1599_v1 = vadd.f32 %v2810_v61, %v4135_v38  ;;  %v1607_v25 = vadd.f32 %v2816_v34, %v4148_v51 }
 0x1d1   : > { %3067 = vrcp.f32 %v1922_v26  ;;  %v1920_v27 = vadd.f32 1.0, %v3042_v33  ;;  %v2448_v29 = vmul.f32 -1.442695, %v4196_v45  ;;  %v4202_v8 = vadd.f32 %v2899_v17, %v1604_v22  ;;  %v2830_v36 = vpop.f32.mrf.mxu1 }
 0x1d2   : > { %v3044_v30 = vpop.eup %3043  ;;  %3069 = vpow2.f32 %v2450_v55  ;;  %v1756_v18 = vpop.f32.mrf.mxu0  ;;  %v1612_v23 = vadd.f32 %v2819_v42, %v4165_v11  ;;  %v4212_v47 = vadd.f32 %v2822_v41, %v1454_v63  ;;  %v2828_v2 = vadd.f32 %v2827_v54, %v4180_v62 }
 0x1d3   : > { %v3046_v3 = vpop.eup %3045  ;;  %3071 = vrcp.f32 %v1920_v27  ;;  %v2453_v31 = vmul.f32 -1.442695, %v4202_v8  ;;  %v4208_v4 = vadd.f32 %v1756_v18, %v1596_v9  ;;  %v2832_v13 = vpop.f32.mrf.mxu1  ;;  %v1620_v9 = vadd.f32 %v2825_v15, %v1459_v24 }
 0x1d4   : > { %v3048_v14 = vpop.eup %3047  ;;  %v1925_v48 = vadd.f32 1.0, %v3046_v3  ;;  %3073 = vpow2.f32 %v2448_v29  ;;  %v2900_v21 = vpop.f32.mrf.mxu0  ;;  %v2013_v51 = vmul.f32 %v3044_v30, %v4018_v50  ;;  %v2831_v62 = vadd.f32 %v2830_v36, %v2829_v0 }
 0x1d5   : > { %v3050_v49 = vpop.eup %3049  ;;  %3075 = vpow2.f32 %v2453_v31  ;;  %v2451_v38 = vmul.f32 -1.442695, %v4208_v4  ;;  %v4216_v53 = vadd.f32 %v2900_v21, %v1607_v25  ;;  %v2833_v40 = vpop.f32.mrf.mxu1  ;;  %v2011_v55 = vmul.f32 %v3048_v14, %v4038_v37 }
 0x1d6   : > { %v3052_v59 = vpop.eup %3051  ;;  %3077 = vrcp.f32 %v1925_v48  ;;  %v1923_v46 = vadd.f32 1.0, %v3050_v49  ;;  %v1759_v61 = vpop.f32.mrf.mxu0  ;;  %v1628_v14 = vadd.f32 %v2831_v62, %v4014_v44  ;;  %v2834_v49 = vadd.f32 %v2833_v40, %v2832_v13 }
 0x1d7   : > { %v3054_v11 = vpop.eup %3053  ;;  %v2014_v63 = vmul.f32 %v3052_v59, %v4051_v12  ;;  %3079 = vpow2.f32 %v2451_v38  ;;  %v2454_v34 = vmul.f32 -1.442695, %v4216_v53  ;;  %v4222_v52 = vadd.f32 %v1759_v61, %v1599_v1  ;;  %v2835_v22 = vpop.f32.mrf.mxu1 }
 0x1d8   : > { %v3056_v26 = vpop.eup %3055  ;;  %3081 = vrcp.f32 %v1923_v46  ;;  %v1926_v50 = vadd.f32 1.0, %v3054_v11  ;;  %v2903_v54 = vpop.f32.mrf.mxu0 }
 0x1d9   : > { %v3058_v12 = vpop.eup %3057  ;;  %v2542_v33 = vpack.c.bf16 %v2014_v63, %v2013_v51  ;;  %v2012_v42 = vmul.f32 %v3056_v26, %v4064_v7  ;;  %3083 = vpow2.f32 %v2454_v34  ;;  %v2452_v41 = vmul.f32 -1.442695, %v4222_v52  ;;  %v2836_v15 = vpop.f32.mrf.mxu1 }
 0x1da   : > { %v3060_v17 = vpop.eup %3059  ;;  %3085 = vrcp.f32 %v1926_v50  ;;  %v1924_v37 = vadd.f32 1.0, %v3058_v12  ;;  %v4232_v27 = vadd.f32 %v2903_v54, %v1620_v9  ;;  %v2837_v29 = vadd.f32 %v2836_v15, %v2835_v22  ;;  %v1772_v30 = vpop.f32.mrf.mxu0 }
 0x1db   : > { %v3062_v24 = vpop.eup %3061  ;;  %2614 = vst [vmem:[%s4228_s28 + $0x8] sm:$0xff] %v2542_v33   ;;  %v2537_v0 = vpack.c.bf16 %v2012_v42, %v2011_v55  ;;  %3087 = vpow2.f32 %v2452_v41  ;;  %v4235_v36 = vadd.f32 %v1772_v30, %v1612_v23  ;;  %v2838_v18 = vpop.f32.mrf.mxu1  ;;  %v1623_v7 = vadd.f32 %v2828_v2, %v1462_v60 }
 0x1dc   : > { %v3064_v1 = vpop.eup %3063  ;;  %3089 = vrcp.f32 %v1924_v37  ;;  %v1929_v3 = vadd.f32 1.0, %v3062_v24  ;;  %v2457_v31 = vmul.f32 -1.442695, %v4232_v27  ;;  %v2904_v25 = vpop.f32.mrf.mxu0  ;;  %v2017_v21 = vmul.f32 %v3060_v17, %v4077_v56  ;;  %v4378_v37 = vld [vmem:[#allocation2_spill] sm:$0xff] }
 0x1dd   : > { %v3066_v48 = vpop.eup %3065  ;;  %2538 = vst [vmem:[%s4228_s28] sm:$0xff] %v2537_v0   ;;  %v2455_v38 = vmul.f32 -1.442695, %v4235_v36  ;;  %v4242_v9 = vadd.f32 %v2904_v25, %v1623_v7  ;;  %v2839_v23 = vpop.f32.mrf.mxu1  ;;  %v1636_v2 = vadd.f32 %v2837_v29, %v4030_v28  ;;  %v2015_v63 = vmul.f32 %v3064_v1, %v4088_v57 }
 0x1de   : > { %v3068_v59 = vpop.eup %3067  ;;  %3091 = vrcp.f32 %v1929_v3  ;;  %v1927_v60 = vadd.f32 1.0, %v3066_v48  ;;  %v2840_v51 = vadd.f32 %v2839_v23, %v2838_v18  ;;  %v1775_v46 = vpop.f32.mrf.mxu0  ;;  %v1483_v29 = vadd.f32 %v4378_v37, %v3901_v5  ;;  %v4379_v3 = vld [vmem:[#allocation19_spill] sm:$0xff] }
 0x1df   : > { %v3070_v61 = vpop.eup %3069  ;;  %v2018_v44 = vmul.f32 %v3068_v59, %v4104_v20  ;;  %3093 = vpow2.f32 %v2457_v31  ;;  %v2458_v11 = vmul.f32 -1.442695, %v4242_v9  ;;  %v4248_v56 = vadd.f32 %v1775_v46, %v4212_v47  ;;  %v2841_v13 = vpop.f32.mrf.mxu1 }
 0x1e0   : > { %v3072_v40 = vpop.eup %3071  ;;  %3095 = vrcp.f32 %v1927_v60  ;;  %v1930_v34 = vadd.f32 1.0, %v3070_v61  ;;  %v2907_v22 = vpop.f32.mrf.mxu0  ;;  %v1639_v26 = vadd.f32 %v2840_v51, %v4034_v6  ;;  %v1631_v31 = vadd.f32 %v2834_v49, %v4379_v3 }
 0x1e1   : > { %v3074_v28 = vpop.eup %3073  ;;  %v2552_v55 = vpack.c.bf16 %v2018_v44, %v2017_v21  ;;  %v2016_v20 = vmul.f32 %v3072_v40, %v4118_v39  ;;  %3097 = vpow2.f32 %v2455_v38  ;;  %v2456_v50 = vmul.f32 -1.442695, %v4248_v56  ;;  %v2842_v62 = vpop.f32.mrf.mxu1 }
 0x1e2   : > { %v3076_v47 = vpop.eup %3075  ;;  %3099 = vrcp.f32 %v1930_v34  ;;  %v1928_v54 = vadd.f32 1.0, %v3074_v28  ;;  %v4254_v12 = vadd.f32 %v2907_v22, %v1636_v2  ;;  %v2843_v57 = vadd.f32 %v2842_v62, %v2841_v13  ;;  %v1788_v33 = vpop.f32.mrf.mxu0 }
 0x1e3   : > { %v3078_v42 = vpop.eup %3077  ;;  %2616 = vst [vmem:[%s4228_s28 + $0x18] sm:$0xff] %v2552_v55   ;;  %v2547_v41 = vpack.c.bf16 %v2016_v20, %v2015_v63  ;;  %v1933_v6 = vadd.f32 1.0, %v3076_v47  ;;  %3101 = vpow2.f32 %v2458_v11  ;;  %v4257_v15 = vadd.f32 %v1788_v33, %v1628_v14  ;;  %v2844_v39 = vpop.f32.mrf.mxu1  ;;  %v4380_v14 = vld [vmem:[#allocation4_spill] sm:$0xff] }
 0x1e4   : > { %v3080_v17 = vpop.eup %3079  ;;  %3103 = vrcp.f32 %v1928_v54  ;;  %v2461_v30 = vmul.f32 -1.442695, %v4254_v12  ;;  %v2908_v24 = vpop.f32.mrf.mxu0  ;;  %v1491_v48 = vadd.f32 %v4380_v14, %v3901_v5  ;;  %v2021_v21 = vmul.f32 %v3078_v42, %v4130_v58 }
 0x1e5   : > { %v3082_v0 = vpop.eup %3081  ;;  %2615 = vst [vmem:[%s4228_s28 + $0x10] sm:$0xff] %v2547_v41   ;;  %3105 = vrcp.f32 %v1933_v6  ;;  %v1931_v18 = vadd.f32 1.0, %v3080_v17  ;;  %v4263_v7 = vadd.f32 %v2908_v24, %v1639_v26  ;;  %v2845_v1 = vpop.f32.mrf.mxu1  ;;  %v2459_v38 = vmul.f32 -1.442695, %v4257_v15 }
 0x1e6   : > { %v3084_v25 = vpop.eup %3083  ;;  %3107 = vpow2.f32 %v2456_v50  ;;  %v1791_v23 = vpop.f32.mrf.mxu0  ;;  %v1644_v2 = vadd.f32 %v2843_v57, %v1483_v29  ;;  %v2019_v49 = vmul.f32 %v3082_v0, %v4143_v10  ;;  %v2846_v63 = vadd.f32 %v2845_v1, %v2844_v39  ;;  %v4382_v29 = vld [vmem:[#allocation5_spill] sm:$0xff] }
 0x1e7   : > { %v3086_v59 = vpop.eup %3085  ;;  %3109 = vrcp.f32 %v1931_v18  ;;  %v1934_v60 = vadd.f32 1.0, %v3084_v25  ;;  %v4270_v51 = vadd.f32 %v1791_v23, %v1631_v31  ;;  %v2847_v46 = vpop.f32.mrf.mxu1  ;;  %v2462_v11 = vmul.f32 -1.442695, %v4263_v7 }
 0x1e8   : > { %v3088_v61 = vpop.eup %3087  ;;  %v2022_v44 = vmul.f32 %v3086_v59, %v4155_v32  ;;  %3111 = vpow2.f32 %v2461_v30  ;;  %v2911_v58 = vpop.f32.mrf.mxu0  ;;  %v4381_v32 = vld [vmem:[#allocation3_spill] sm:$0xff]  ;;  %v1494_v30 = vadd.f32 %v4382_v29, %v3901_v5 }
 0x1e9   : > { %v3090_v13 = vpop.eup %3089  ;;  %3113 = vrcp.f32 %v1934_v60  ;;  %v1932_v40 = vadd.f32 1.0, %v3088_v61  ;;  %v2460_v34 = vmul.f32 -1.442695, %v4270_v51  ;;  %v2848_v22 = vpop.f32.mrf.mxu1  ;;  %v1486_v50 = vadd.f32 %v4381_v32, %v3901_v5 }
 0x1ea   : > { %v2562_v26 = vpack.c.bf16 %v2022_v44, %v2021_v21  ;;  %v2020_v28 = vmul.f32 %v3090_v13, %v4162_v43  ;;  %3115 = vpow2.f32 %v2459_v38  ;;  %v2849_v55 = vadd.f32 %v2848_v22, %v2847_v46  ;;  %v1804_v10 = vpop.f32.mrf.mxu0 }
 0x1eb   : > { %v3092_v20 = vpop.eup %3091  ;;  %3117 = vrcp.f32 %v1932_v40  ;;  %v4279_v62 = vadd.f32 %v1804_v10, %v1644_v2  ;;  %v2850_v47 = vpop.f32.mrf.mxu1  ;;  %v1647_v17 = vadd.f32 %v2846_v63, %v1486_v50 }
 0x1ec   : > { %v3094_v54 = vpop.eup %3093  ;;  %2618 = vst [vmem:[%s4228_s28 + $0x28] sm:$0xff] %v2562_v26   ;;  %v2557_v57 = vpack.c.bf16 %v2020_v28, %v2019_v49  ;;  %3119 = vpow2.f32 %v2462_v11  ;;  %v1652_v33 = vadd.f32 %v2849_v55, %v1491_v48  ;;  %v2912_v42 = vpop.f32.mrf.mxu0  ;;  %v2025_v3 = vmul.f32 %v3092_v20, %v4171_v35 }
 0x1ed   : > { %v3096_v41 = vpop.eup %3095  ;;  %v1937_v43 = vadd.f32 1.0, %v3094_v54  ;;  %3121 = vpow2.f32 %v2460_v34  ;;  %v2463_v6 = vmul.f32 -1.442695, %v4279_v62  ;;  %v2851_v39 = vpop.f32.mrf.mxu1 }
 0x1ee   : > { %v3098_v37 = vpop.eup %3097  ;;  %2617 = vst [vmem:[%s4228_s28 + $0x20] sm:$0xff] %v2557_v57   ;;  %v4286_v24 = vadd.f32 %v2911_v58, %v1652_v33  ;;  %v2852_v0 = vadd.f32 %v2851_v39, %v2850_v47  ;;  %v1807_v18 = vpop.f32.mrf.mxu0  ;;  %v2023_v23 = vmul.f32 %v3096_v41, %v4178_v16 }
 0x1ef   : > { %v3100_v1 = vpop.eup %3099  ;;  %3123 = vrcp.f32 %v1937_v43  ;;  %v1935_v31 = vadd.f32 1.0, %v3098_v37  ;;  %v4289_v25 = vadd.f32 %v1807_v18, %v1647_v17 }
 0x1f0   : > { %v3102_v14 = vpop.eup %3101  ;;  %v2026_v48 = vmul.f32 %v3100_v1, %v4188_v19  ;;  %v2465_v21 = vmul.f32 -1.442695, %v4286_v24  ;;  %3125 = vpow2.f32 %v2463_v6  ;;  %v1655_v5 = vadd.f32 %v2852_v0, %v1494_v30 }
 0x1f1   : > { %v3104_v38 = vpop.eup %3103  ;;  %3127 = vrcp.f32 %v1935_v31  ;;  %v1938_v59 = vadd.f32 1.0, %v3102_v14  ;;  %v2464_v60 = vmul.f32 -1.442695, %v4289_v25 }
 0x1f2   : > { %v3106_v35 = vpop.eup %3105  ;;  %v2572_v46 = vpack.c.bf16 %v2026_v48, %v2025_v3  ;;  %v2024_v2 = vmul.f32 %v3104_v38, %v4196_v45  ;;  %3129 = vpow2.f32 %v2465_v21  ;;  %v4296_v61 = vadd.f32 %v2912_v42, %v1655_v5 }
 0x1f3   : > { %v3108_v19 = vpop.eup %3107  ;;  %3131 = vrcp.f32 %v1938_v59  ;;  %v2029_v45 = vmul.f32 %v3106_v35, %v4202_v8 }
 0x1f4   : > { %v3110_v49 = vpop.eup %3109  ;;  %2620 = vst [vmem:[%s4228_s28 + $0x38] sm:$0xff] %v2572_v46   ;;  %v2567_v44 = vpack.c.bf16 %v2024_v2, %v2023_v23  ;;  %v1936_v11 = vadd.f32 1.0, %v3108_v19  ;;  %v2466_v16 = vmul.f32 -1.442695, %v4296_v61  ;;  %3133 = vpow2.f32 %v2464_v60 }
 0x1f5   : > { %v3112_v58 = vpop.eup %3111  ;;  %v2027_v55 = vmul.f32 %v3110_v49, %v4208_v4 }
 0x1f6   : > { %v3114_v13 = vpop.eup %3113  ;;  %2619 = vst [vmem:[%s4228_s28 + $0x30] sm:$0xff] %v2567_v44   ;;  %3135 = vrcp.f32 %v1936_v11  ;;  %v1941_v40 = vadd.f32 1.0, %v3112_v58 }
 0x1f7   : > { %v3116_v63 = vpop.eup %3115  ;;  %v2030_v34 = vmul.f32 %v3114_v13, %v4216_v53  ;;  %3137 = vpow2.f32 %v2466_v16 }
 0x1f8   : > { %v3118_v22 = vpop.eup %3117  ;;  %v1939_v26 = vadd.f32 1.0, %v3116_v63  ;;  %3139 = vrcp.f32 %v1941_v40 }
 0x1f9   : > { %v3120_v28 = vpop.eup %3119  ;;  %v2582_v10 = vpack.c.bf16 %v2030_v34, %v2029_v45  ;;  %v2028_v20 = vmul.f32 %v3118_v22, %v4222_v52 }
 0x1fa   : > { %v3122_v32 = vpop.eup %3121  ;;  %v1942_v50 = vadd.f32 1.0, %v3120_v28  ;;  %3141 = vrcp.f32 %v1939_v26 }
 0x1fb   : > { %2622 = vst [vmem:[%s4228_s28 + $0x48] sm:$0xff] %v2582_v10   ;;  %v2577_v47 = vpack.c.bf16 %v2028_v20, %v2027_v55  ;;  %v1940_v54 = vadd.f32 1.0, %v3122_v32 }
 0x1fc   : > { %v3124_v8 = vpop.eup %3123  ;;  %3143 = vrcp.f32 %v1942_v50 }
 0x1fd   : > { %v3126_v53 = vpop.eup %3125  ;;  %2621 = vst [vmem:[%s4228_s28 + $0x40] sm:$0xff] %v2577_v47   ;;  %3145 = vrcp.f32 %v1940_v54  ;;  %v2033_v52 = vmul.f32 %v3124_v8, %v4232_v27 }
 0x1fe   : > { %v3128_v57 = vpop.eup %3127  ;;  %v1943_v33 = vadd.f32 1.0, %v3126_v53 }
 0x1ff   : > { %v3130_v42 = vpop.eup %3129  ;;  %v2031_v30 = vmul.f32 %v3128_v57, %v4235_v36 }
 0x200   : > { %v3132_v4 = vpop.eup %3131  ;;  %v1945_v6 = vadd.f32 1.0, %v3130_v42  ;;  %3147 = vrcp.f32 %v1943_v33 }
 0x201   : > { %v3134_v41 = vpop.eup %3133  ;;  %v2034_v43 = vmul.f32 %v3132_v4, %v4242_v9 }
 0x202   : > { %v1944_v39 = vadd.f32 1.0, %v3134_v41 }
 0x203   : > { %v3136_v17 = vpop.eup %3135  ;;  %v2592_v37 = vpack.c.bf16 %v2034_v43, %v2033_v52 }
 0x204   : > { %v3138_v29 = vpop.eup %3137  ;;  %v2032_v0 = vmul.f32 %v3136_v17, %v4248_v56  ;;  %3149 = vrcp.f32 %v1944_v39 }
 0x205   : > { %2624 = vst [vmem:[%s4228_s28 + $0x58] sm:$0xff] %v2592_v37   ;;  %3151 = vrcp.f32 %v1945_v6  ;;  %v1946_v18 = vadd.f32 1.0, %v3138_v29  ;;  %v3140_v1 = vpop.eup %3139 }
 0x206   : > { %v2587_v27 = vpack.c.bf16 %v2032_v0, %v2031_v30  ;;  %v2037_v14 = vmul.f32 %v3140_v1, %v4254_v12 }
 0x207   : > { %3153 = vrcp.f32 %v1946_v18  ;;  %v3142_v9 = vpop.eup %3141 }
 0x208   : > { %2623 = vst [vmem:[%s4228_s28 + $0x50] sm:$0xff] %v2587_v27   ;;  %v2035_v36 = vmul.f32 %v3142_v9, %v4257_v15 }
 0x209   : > { %v3144_v3 = vpop.eup %3143 }
 0x20a   : > { %v3146_v31 = vpop.eup %3145  ;;  %v2038_v48 = vmul.f32 %v3144_v3, %v4263_v7 }
 0x20b   : > { %v2036_v56 = vmul.f32 %v3146_v31, %v4270_v51 }
 0x20c   : > { %v2602_v21 = vpack.c.bf16 %v2038_v48, %v2037_v14 }
 0x20d   : > { %v2597_v5 = vpack.c.bf16 %v2036_v56, %v2035_v36  ;;  %v3148_v38 = vpop.eup %3147 }
 0x20e   : > { %2626 = vst [vmem:[%s4228_s28 + $0x68] sm:$0xff] %v2602_v21   ;;  %v2039_v60 = vmul.f32 %v3148_v38, %v4279_v62 }
 0x20f   : > { %2625 = vst [vmem:[%s4228_s28 + $0x60] sm:$0xff] %v2597_v5  }
 0x211   : > { %v3150_v23 = vpop.eup %3149 }
 0x212   : > { %v3152_v59 = vpop.eup %3151  ;;  %v2040_v35 = vmul.f32 %v3150_v23, %v4289_v25 }
 0x213   : > { %v2041_v7 = vmul.f32 %v3152_v59, %v4286_v24 }
 0x214   : > { %v3154_v12 = vpop.eup %3153  ;;  %v2607_v46 = vpack.c.bf16 %v2040_v35, %v2039_v60 }
 0x215   : > { %v2042_v15 = vmul.f32 %v3154_v12, %v4296_v61 }
 0x216   : > { %2627 = vst [vmem:[%s4228_s28 + $0x70] sm:$0xff] %v2607_v46  }
 0x217   : > { %v2612_v51 = vpack.c.bf16 %v2042_v15, %v2041_v7 }
 0x219   : > { %2628 = vst [vmem:[%s4228_s28 + $0x78] sm:$0xff] %v2612_v51  }
 0x21a PF: > { %s13_s14 = sadd.s32 1, %s3177_s14   ;;  %s4383_s12 = smov %s3173_s13 }
 0x21b   : > { %p10_p5 = scmp.ge.s32.totalorder %s13_s14, 4   ;;  %s4384_s13 = smov %s4386_s15 }
 0x21d   :  { %12 = sbr.rel (!%p10_p5) target bundleno = 2 (0x2), region = 68 }

</bundles_post_ra>
